<compile_context>
chip_gen: v7x
topology: tpu7x:2x2x1
jax: 0.10.0
libtpu: 0.0.40
codegen_flags: <defaults>
</compile_context>

<pallas_src>
from functools import partial

import jax
import jax.numpy as jnp
from jax import lax
from jax.experimental import pallas as pl
from jax.experimental.pallas import tpu as pltpu


# ----------------------------- Pallas kernel ------------------------------ #
def _encoder_kernel(
    T, B, H, GP,        # static ints (bound via functools.partial)
    emb_ref,            # [T*B, E]    bf16   embedded src, time-major
    w_in_ref,           # [E, 3*GP]   bf16   input proj, fwd lanes 0:H / bwd H:2H
    b_gi_ref,           # [1, 3*GP]   f32    b_ih (+ b_hh for r,z) folded in
    w_hh_ref,           # [GP, 3*GP]  bf16   block-diagonal recurrent weights
    b_hn_ref,           # [1, GP]     f32    b_hh for the n gate only
    w_fc_ref,           # [GP, D]     bf16   fc weights (zero rows for padding)
    b_fc_ref,           # [1, D]      f32
    out_ref,            # [T*B, GP]   f32    lane-padded combined outputs
    hid_ref,            # [B, D]      f32    tanh(fc(cat(h_fwd, h_bwd)))
    gi_scr,             # VMEM [T*B, 3*GP] f32 scratch (precomputed gate inputs)
):
    # (1) Hoisted input projection: ONE well-shaped MXU matmul covering all
    #     timesteps and both directions (no duplicated embedding, no
    #     structural-zero fwd->bwd block); biases pre-folded.
    # TODO(synk): for tighter v7x VMEM budgets gi_scr could be stored in bf16.
    gi_scr[...] = (
        jnp.dot(emb_ref[...], w_in_ref[...],
                preferred_element_type=jnp.float32)
        + b_gi_ref[...]
    )

    # Lane masks (hoisted).  Within each GP-wide gate block: lanes 0:H = fwd
    # direction, lanes H:2H = bwd direction, 2H:GP = zero padding.
    lane1 = lax.broadcasted_iota(jnp.int32, (B, GP), 1)
    m_fwd = lane1 < H                                        # [B, GP]
    lane3 = lax.broadcasted_iota(jnp.int32, (B, 3 * GP), 1)
    m_dir = (lane3 % GP) < H                                 # [B, 3*GP]

    # (2) Pre-loop pairing: row-block i must hold fwd gate inputs from emb[i]
    #     and bwd gate inputs from emb[T-1-i].  Pairwise lane-select swap (all
    #     static slices, full-width stores) keeps the serial recurrence free of
    #     per-step selects.
    for i in range((T + 1) // 2):
        j = T - 1 - i
        gi_i = gi_scr[i * B:(i + 1) * B, :]
        gi_j = gi_scr[j * B:(j + 1) * B, :]
        gi_scr[i * B:(i + 1) * B, :] = jnp.where(m_dir, gi_i, gi_j)
        gi_scr[j * B:(j + 1) * B, :] = jnp.where(m_dir, gi_j, gi_i)

    w_hh = w_hh_ref[...]
    b_hn = jnp.broadcast_to(b_hn_ref[...], (B, GP))          # hoisted broadcast

    # Fused hidden state: [:, 0:H] = forward h, [:, H:2H] = backward h,
    # [:, 2H:GP] = zero padding (stays exactly zero by construction: zero
    # w_in/w_hh columns and zero biases in the padding lanes).
    h = jnp.zeros((B, GP), jnp.float32)

    # (3) Fused fwd/bwd recurrence, fully unrolled (T is small and static).
    # TODO(synk): for production T use lax.fori_loop(unroll=4..8) or a grid
    # axis instead of a full Python unroll, keep w_hh resident in the MXU via
    # pltpu.matmul_push_rhs/matmul_acc_lhs across steps, and on v7x split the
    # two directions across the 2 TensorCores (core-parallel grid axis).
    for i in range(T):
        gi = gi_scr[i * B:(i + 1) * B, :]                    # [B, 3*GP] f32
        gh = jnp.dot(h.astype(jnp.bfloat16), w_hh,
                     preferred_element_type=jnp.float32)     # [B, 3*GP] f32
        # PyTorch GRU gate order (r, z, n); slices are 128-lane aligned.
        r = jax.nn.sigmoid(gi[:, 0:GP] + gh[:, 0:GP])
        z = jax.nn.sigmoid(gi[:, GP:2 * GP] + gh[:, GP:2 * GP])
        n = jnp.tanh(gi[:, 2 * GP:3 * GP] + r * (gh[:, 2 * GP:3 * GP] + b_hn))
        h = (1.0 - z) * n + z * h
        # Lane-dense, unmasked full-width store of the fused state at step i.
        out_ref[i * B:(i + 1) * B, :] = h

    # (4) Epilogue: the bwd half written at step i belongs to time T-1-i.
    #     Pairwise lane-select swap; all loads/stores remain full GP-wide.
    for i in range((T + 1) // 2):
        j = T - 1 - i
        va = out_ref[i * B:(i + 1) * B, :]
        vb = out_ref[j * B:(j + 1) * B, :]
        out_ref[i * B:(i + 1) * B, :] = jnp.where(m_fwd, va, vb)
        out_ref[j * B:(j + 1) * B, :] = jnp.where(m_fwd, vb, va)

    # (5) hidden = tanh(fc(cat(h_fwd_final, h_bwd_final))).  Padding lanes of h
    #     are zero and the corresponding w_fc rows are zero, so no slicing or
    #     concatenation is needed.
    hid_ref[...] = jnp.tanh(
        jnp.dot(h.astype(jnp.bfloat16), w_fc_ref[...],
                preferred_element_type=jnp.float32)
        + b_fc_ref[...]
    )


# --------------------------- parameter repacking --------------------------- #
def _prep_params(params, H, GP):
    """Repack PyTorch-layout GRU/fc params into the padded kernel layout."""
    f32 = jnp.float32
    E = params["w_ih_f"].shape[1]
    D = params["w_fc"].shape[0]

    def gate(w, g):  # [3H, X] -> transposed [X, H] block of gate g
        return jnp.asarray(w, f32)[g * H:(g + 1) * H, :].T

    # Input projection [E, 3*GP]: both directions read the SAME embedding rows;
    # fwd occupies lanes 0:H and bwd lanes H:2H of each (128-padded) gate block.
    w_in = jnp.zeros((E, 3 * GP), f32)
    b_gi = jnp.zeros((1, 3 * GP), f32)
    for g in range(3):
        w_in = w_in.at[:, g * GP:g * GP + H].set(gate(params["w_ih_f"], g))
        w_in = w_in.at[:, g * GP + H:g * GP + 2 * H].set(
            gate(params["w_ih_b"], g))
        bf = jnp.asarray(params["b_ih_f"], f32)[g * H:(g + 1) * H]
        bb = jnp.asarray(params["b_ih_b"], f32)[g * H:(g + 1) * H]
        if g < 2:  # fold b_hh into the precomputed bias for r and z gates
            bf = bf + jnp.asarray(params["b_hh_f"], f32)[g * H:(g + 1) * H]
            bb = bb + jnp.asarray(params["b_hh_b"], f32)[g * H:(g + 1) * H]
        b_gi = b_gi.at[0, g * GP:g * GP + H].set(bf)
        b_gi = b_gi.at[0, g * GP + H:g * GP + 2 * H].set(bb)

    # Block-diagonal recurrent projection [GP, 3*GP].
    w_hh = jnp.zeros((GP, 3 * GP), f32)
    for g in range(3):
        w_hh = w_hh.at[0:H, g * GP:g * GP + H].set(gate(params["w_hh_f"], g))
        w_hh = w_hh.at[H:2 * H, g * GP + H:g * GP + 2 * H].set(
            gate(params["w_hh_b"], g))

    # b_hh for the n gate (must stay inside the r*(...) term).
    b_hn = jnp.zeros((1, GP), f32)
    b_hn = b_hn.at[0, 0:H].set(jnp.asarray(params["b_hh_f"], f32)[2 * H:3 * H])
    b_hn = b_hn.at[0, H:2 * H].set(
        jnp.asarray(params["b_hh_b"], f32)[2 * H:3 * H])

    # fc: Linear(2H, D), rows 0:2H active, padding rows zero.
    w_fc = jnp.asarray(params["w_fc"], f32)                   # [D, 2H]
    w_fc_pad = jnp.zeros((GP, D), f32).at[0:2 * H, :].set(w_fc.T)
    b_fc = jnp.asarray(params["b_fc"], f32).reshape(1, D)

    return (w_in.astype(jnp.bfloat16), b_gi,
            w_hh.astype(jnp.bfloat16), b_hn,
            w_fc_pad.astype(jnp.bfloat16), b_fc)


# ------------------------------ JAX wrapper -------------------------------- #
def encoder_forward(src, params):
    """src: int32 [T, B]. Returns (outputs [T, B, 2H] f32, hidden [B, D] f32)."""
    emb_tbl = params["embedding"]                     # [V, E]
    H = params["w_hh_f"].shape[0] // 3
    D = params["w_fc"].shape[0]
    T, B = src.shape
    E = emb_tbl.shape[1]
    GP = ((2 * H + 127) // 128) * 128                 # 128-lane-aligned gate width

    # Embedding lookup stays as XLA glue.
    embedded = jnp.take(emb_tbl, src, axis=0).astype(jnp.float32)   # [T, B, E]
    # TODO(synk): dropout is eval-mode identity here (p only matters at train time).
    emb = embedded.reshape(T * B, E).astype(jnp.bfloat16)

    w_in, b_gi, w_hh, b_hn, w_fc_pad, b_fc = _prep_params(params, H, GP)

    vmem = pl.BlockSpec(memory_space=pltpu.MemorySpace.VMEM)

    # TODO(synk): at production sizes, tile over T with a grid/BlockSpec (h
    # carried in scratch across an "arbitrary" axis) instead of keeping
    # emb/gi/outputs whole-array resident in VMEM; on v7x additionally split
    # the two directions across the 2 TensorCores.
    out_pad, hidden = pl.pallas_call(
        partial(_encoder_kernel, T, B, H, GP),
        out_shape=(
            jax.ShapeDtypeStruct((T * B, GP), jnp.float32),
            jax.ShapeDtypeStruct((B, D), jnp.float32),
        ),
        in_specs=[vmem] * 7,
        out_specs=(vmem, vmem),
        scratch_shapes=[pltpu.VMEM((T * B, 3 * GP), jnp.float32)],
        compiler_params=pltpu.CompilerParams(
            vmem_limit_bytes=32 * 1024 * 1024),
    )(emb, w_in, b_gi, w_hh, b_hn, w_fc_pad, b_fc)

    # Lane-dense kernel output; drop the padding lanes here (cheap XLA slice).
    outputs = out_pad.reshape(T, B, GP)[:, :, :2 * H]
    return outputs, hidden


# --------------------------- pure-JAX reference ----------------------------- #
def encoder_reference(src, params):
    emb = jnp.take(params["embedding"], src, axis=0).astype(jnp.float32)
    T, B, _ = emb.shape
    H = params["w_hh_f"].shape[0] // 3

    def cell(x, h, w_ih, w_hh, b_ih, b_hh):
        gi = x @ w_ih.T + b_ih
        gh = h @ w_hh.T + b_hh
        r = jax.nn.sigmoid(gi[:, :H] + gh[:, :H])
        z = jax.nn.sigmoid(gi[:, H:2 * H] + gh[:, H:2 * H])
        n = jnp.tanh(gi[:, 2 * H:] + r * gh[:, 2 * H:])
        return (1.0 - z) * n + z * h

    h = jnp.zeros((B, H), jnp.float32)
    outs_f = []
    for t in range(T):
        h = cell(emb[t], h, params["w_ih_f"], params["w_hh_f"],
                 params["b_ih_f"], params["b_hh_f"])
        outs_f.append(h)
    h_f = h

    h = jnp.zeros((B, H), jnp.float32)
    outs_b = [None] * T
    for t in range(T - 1, -1, -1):
        h = cell(emb[t], h, params["w_ih_b"], params["w_hh_b"],
                 params["b_ih_b"], params["b_hh_b"])
        outs_b[t] = h
    h_b = h

    outputs = jnp.stack([jnp.concatenate([outs_f[t], outs_b[t]], axis=-1)
                         for t in range(T)], axis=0)
    hidden = jnp.tanh(jnp.concatenate([h_f, h_b], axis=-1) @ params["w_fc"].T
                      + params["b_fc"])
    return outputs, hidden


# --------------------------------- main ------------------------------------ #
if __name__ == "__main__":
    # Small, module-consistent shapes.
    VOCAB, EMB, ENC_H, DEC_H = 50, 32, 32, 32
    T, B = 8, 8

    key = jax.random.PRNGKey(0)
    ks = jax.random.split(key, 12)
    s = 1.0 / jnp.sqrt(ENC_H)

    def u(k, shape):
        return jax.random.uniform(k, shape, jnp.float32, -s, s)

    params = {
        "embedding": jax.random.normal(ks[0], (VOCAB, EMB), jnp.float32),
        # forward direction (PyTorch weight_ih_l0 / weight_hh_l0, gate order r,z,n)
        "w_ih_f": u(ks[1], (3 * ENC_H, EMB)),
        "w_hh_f": u(ks[2], (3 * ENC_H, ENC_H)),
        "b_ih_f": u(ks[3], (3 * ENC_H,)),
        "b_hh_f": u(ks[4], (3 * ENC_H,)),
        # reverse direction
        "w_ih_b": u(ks[5], (3 * ENC_H, EMB)),
        "w_hh_b": u(ks[6], (3 * ENC_H, ENC_H)),
        "b_ih_b": u(ks[7], (3 * ENC_H,)),
        "b_hh_b": u(ks[8], (3 * ENC_H,)),
        # fc: Linear(2*ENC_H, DEC_H)
        "w_fc": u(ks[9], (DEC_H, 2 * ENC_H)),
        "b_fc": u(ks[10], (DEC_H,)),
    }

    src = jax.random.randint(ks[11], (T, B), 0, VOCAB, dtype=jnp.int32)

    outputs, hidden = jax.block_until_ready(jax.jit(encoder_forward)(src, params))

    ref_out, ref_hid = encoder_reference(src, params)
    assert outputs.shape == (T, B, 2 * ENC_H)
    assert hidden.shape == (B, DEC_H)
    # bf16 matmul operands (f32 accumulation / gate math) -> loosened tolerance.
    assert jnp.allclose(outputs, ref_out, atol=3e-2, rtol=3e-2)
    assert jnp.allclose(hidden, ref_hid, atol=3e-2, rtol=3e-2)

    print("KERNEL_OK")
</pallas_src>

<mosaic_0001>
module attributes {stable_mosaic.version = 11 : i64} {
  func.func @_encoder_kernel(%arg0: memref<64x32xbf16, #tpu.memory_space<vmem>>, %arg1: memref<32x384xbf16, #tpu.memory_space<vmem>>, %arg2: memref<1x384xf32, #tpu.memory_space<vmem>>, %arg3: memref<128x384xbf16, #tpu.memory_space<vmem>>, %arg4: memref<1x128xf32, #tpu.memory_space<vmem>>, %arg5: memref<128x32xbf16, #tpu.memory_space<vmem>>, %arg6: memref<1x32xf32, #tpu.memory_space<vmem>>, %arg7: memref<64x128xf32, #tpu.memory_space<vmem>>, %arg8: memref<8x32xf32, #tpu.memory_space<vmem>>, %arg9: memref<64x384xf32, #tpu.memory_space<vmem>>) attributes {dimension_semantics = [], scalar_prefetch = 0 : i64, scratch_operands = 1 : i64, tpu.core_type = #tpu.core_type<tc>} {
    %c0 = arith.constant 0 : index
    %c0_0 = arith.constant 0 : index
    %0 = vector.load %arg0[%c0, %c0_0] : memref<64x32xbf16, #tpu.memory_space<vmem>>, vector<64x32xbf16>
    %c0_1 = arith.constant 0 : index
    %c0_2 = arith.constant 0 : index
    %1 = vector.load %arg1[%c0_1, %c0_2] : memref<32x384xbf16, #tpu.memory_space<vmem>>, vector<32x384xbf16>
    %cst = arith.constant dense<0.000000e+00> : vector<64x384xf32>
    %2 = tpu.matmul %0, %1, %cst {dimension_numbers = #tpu.dot_dimension_numbers<[1], [0], [0], [1], [0, 0, 1, 1], [], []>} : vector<64x32xbf16>, vector<32x384xbf16>, vector<64x384xf32> -> vector<64x384xf32>
    %c0_3 = arith.constant 0 : index
    %c0_4 = arith.constant 0 : index
    %3 = vector.load %arg2[%c0_3, %c0_4] : memref<1x384xf32, #tpu.memory_space<vmem>>, vector<1x384xf32>
    %4 = vector.broadcast %3 : vector<1x384xf32> to vector<64x384xf32>
    %5 = arith.addf %2, %4 : vector<64x384xf32>
    %c0_5 = arith.constant 0 : index
    %c0_6 = arith.constant 0 : index
    %6 = vector.load %arg9[%c0_5, %c0_6] : memref<64x384xf32, #tpu.memory_space<vmem>>, vector<64x384xf32>
    tpu.vector_store %arg9[%c0_5, %c0_6], %5 {strides = array<i32>} : memref<64x384xf32, #tpu.memory_space<vmem>>, vector<64x384xf32>,
    %7 = tpu.iota {dimensions = array<i32: 1>} : vector<8x128xi32>
    %c32_i32 = arith.constant 32 : i32
    %8 = vector.broadcast %c32_i32 : i32 to vector<8x128xi32>
    %9 = arith.cmpi slt, %7, %8 : vector<8x128xi32>
    %10 = tpu.iota {dimensions = array<i32: 1>} : vector<8x384xi32>
    %c128_i32 = arith.constant 128 : i32
    %c0_i32 = arith.constant 0 : i32
    %11 = arith.cmpi eq, %c128_i32, %c0_i32 : i32
    %c1_i32 = arith.constant 1 : i32
    %12 = arith.select %11, %c1_i32, %c128_i32 : i32
    %13 = vector.broadcast %12 : i32 to vector<8x384xi32>
    %14 = arith.remsi %10, %13 : vector<8x384xi32>
    %c0_i32_7 = arith.constant 0 : i32
    %15 = vector.broadcast %c0_i32_7 : i32 to vector<8x384xi32>
    %16 = arith.cmpi ne, %14, %15 : vector<8x384xi32>
    %c0_i32_8 = arith.constant 0 : i32
    %17 = vector.broadcast %c0_i32_8 : i32 to vector<8x384xi32>
    %18 = arith.cmpi slt, %14, %17 : vector<8x384xi32>
    %c0_i32_9 = arith.constant 0 : i32
    %19 = arith.cmpi slt, %12, %c0_i32_9 : i32
    %20 = vector.broadcast %19 : i1 to vector<8x384xi1>
    %21 = vector.broadcast %20 : vector<8x384xi1> to vector<8x384xi1>
    %22 = arith.xori %18, %21 : vector<8x384xi1>
    %23 = arith.andi %22, %16 : vector<8x384xi1>
    %24 = vector.broadcast %12 : i32 to vector<8x384xi32>
    %25 = arith.addi %14, %24 : vector<8x384xi32>
    %26 = arith.select %23, %25, %14 : vector<8x384xi1>, vector<8x384xi32>
    %c32_i32_10 = arith.constant 32 : i32
    %27 = vector.broadcast %c32_i32_10 : i32 to vector<8x384xi32>
    %28 = arith.cmpi slt, %26, %27 : vector<8x384xi32>
    %c0_11 = arith.constant 0 : index
    %c0_12 = arith.constant 0 : index
    %29 = vector.load %arg9[%c0_11, %c0_12] : memref<64x384xf32, #tpu.memory_space<vmem>>, vector<8x384xf32>
    %c56 = arith.constant 56 : index
    %c0_13 = arith.constant 0 : index
    %30 = vector.load %arg9[%c56, %c0_13] : memref<64x384xf32, #tpu.memory_space<vmem>>, vector<8x384xf32>
    %31 = arith.select %28, %29, %30 : vector<8x384xi1>, vector<8x384xf32>
    %c0_14 = arith.constant 0 : index
    %c0_15 = arith.constant 0 : index
    %32 = vector.load %arg9[%c0_14, %c0_15] : memref<64x384xf32, #tpu.memory_space<vmem>>, vector<8x384xf32>
    tpu.vector_store %arg9[%c0_14, %c0_15], %31 {strides = array<i32>} : memref<64x384xf32, #tpu.memory_space<vmem>>, vector<8x384xf32>,
    %33 = arith.select %28, %30, %29 : vector<8x384xi1>, vector<8x384xf32>
    %c56_16 = arith.constant 56 : index
    %c0_17 = arith.constant 0 : index
    %34 = vector.load %arg9[%c56_16, %c0_17] : memref<64x384xf32, #tpu.memory_space<vmem>>, vector<8x384xf32>
    tpu.vector_store %arg9[%c56_16, %c0_17], %33 {strides = array<i32>} : memref<64x384xf32, #tpu.memory_space<vmem>>, vector<8x384xf32>,
    %c8 = arith.constant 8 : index
    %c0_18 = arith.constant 0 : index
    %35 = vector.load %arg9[%c8, %c0_18] : memref<64x384xf32, #tpu.memory_space<vmem>>, vector<8x384xf32>
    %c48 = arith.constant 48 : index
    %c0_19 = arith.constant 0 : index
    %36 = vector.load %arg9[%c48, %c0_19] : memref<64x384xf32, #tpu.memory_space<vmem>>, vector<8x384xf32>
    %37 = arith.select %28, %35, %36 : vector<8x384xi1>, vector<8x384xf32>
    %c8_20 = arith.constant 8 : index
    %c0_21 = arith.constant 0 : index
    %38 = vector.load %arg9[%c8_20, %c0_21] : memref<64x384xf32, #tpu.memory_space<vmem>>, vector<8x384xf32>
    tpu.vector_store %arg9[%c8_20, %c0_21], %37 {strides = array<i32>} : memref<64x384xf32, #tpu.memory_space<vmem>>, vector<8x384xf32>,
    %39 = arith.select %28, %36, %35 : vector<8x384xi1>, vector<8x384xf32>
    %c48_22 = arith.constant 48 : index
    %c0_23 = arith.constant 0 : index
    %40 = vector.load %arg9[%c48_22, %c0_23] : memref<64x384xf32, #tpu.memory_space<vmem>>, vector<8x384xf32>
    tpu.vector_store %arg9[%c48_22, %c0_23], %39 {strides = array<i32>} : memref<64x384xf32, #tpu.memory_space<vmem>>, vector<8x384xf32>,
    %c16 = arith.constant 16 : index
    %c0_24 = arith.constant 0 : index
    %41 = vector.load %arg9[%c16, %c0_24] : memref<64x384xf32, #tpu.memory_space<vmem>>, vector<8x384xf32>
    %c40 = arith.constant 40 : index
    %c0_25 = arith.constant 0 : index
    %42 = vector.load %arg9[%c40, %c0_25] : memref<64x384xf32, #tpu.memory_space<vmem>>, vector<8x384xf32>
    %43 = arith.select %28, %41, %42 : vector<8x384xi1>, vector<8x384xf32>
    %c16_26 = arith.constant 16 : index
    %c0_27 = arith.constant 0 : index
    %44 = vector.load %arg9[%c16_26, %c0_27] : memref<64x384xf32, #tpu.memory_space<vmem>>, vector<8x384xf32>
    tpu.vector_store %arg9[%c16_26, %c0_27], %43 {strides = array<i32>} : memref<64x384xf32, #tpu.memory_space<vmem>>, vector<8x384xf32>,
    %45 = arith.select %28, %42, %41 : vector<8x384xi1>, vector<8x384xf32>
    %c40_28 = arith.constant 40 : index
    %c0_29 = arith.constant 0 : index
    %46 = vector.load %arg9[%c40_28, %c0_29] : memref<64x384xf32, #tpu.memory_space<vmem>>, vector<8x384xf32>
    tpu.vector_store %arg9[%c40_28, %c0_29], %45 {strides = array<i32>} : memref<64x384xf32, #tpu.memory_space<vmem>>, vector<8x384xf32>,
    %c24 = arith.constant 24 : index
    %c0_30 = arith.constant 0 : index
    %47 = vector.load %arg9[%c24, %c0_30] : memref<64x384xf32, #tpu.memory_space<vmem>>, vector<8x384xf32>
    %c32 = arith.constant 32 : index
    %c0_31 = arith.constant 0 : index
    %48 = vector.load %arg9[%c32, %c0_31] : memref<64x384xf32, #tpu.memory_space<vmem>>, vector<8x384xf32>
    %49 = arith.select %28, %47, %48 : vector<8x384xi1>, vector<8x384xf32>
    %c24_32 = arith.constant 24 : index
    %c0_33 = arith.constant 0 : index
    %50 = vector.load %arg9[%c24_32, %c0_33] : memref<64x384xf32, #tpu.memory_space<vmem>>, vector<8x384xf32>
    tpu.vector_store %arg9[%c24_32, %c0_33], %49 {strides = array<i32>} : memref<64x384xf32, #tpu.memory_space<vmem>>, vector<8x384xf32>,
    %51 = arith.select %28, %48, %47 : vector<8x384xi1>, vector<8x384xf32>
    %c32_34 = arith.constant 32 : index
    %c0_35 = arith.constant 0 : index
    %52 = vector.load %arg9[%c32_34, %c0_35] : memref<64x384xf32, #tpu.memory_space<vmem>>, vector<8x384xf32>
    tpu.vector_store %arg9[%c32_34, %c0_35], %51 {strides = array<i32>} : memref<64x384xf32, #tpu.memory_space<vmem>>, vector<8x384xf32>,
    %c0_36 = arith.constant 0 : index
    %c0_37 = arith.constant 0 : index
    %53 = vector.load %arg3[%c0_36, %c0_37] : memref<128x384xbf16, #tpu.memory_space<vmem>>, vector<128x384xbf16>
    %c0_38 = arith.constant 0 : index
    %c0_39 = arith.constant 0 : index
    %54 = vector.load %arg4[%c0_38, %c0_39] : memref<1x128xf32, #tpu.memory_space<vmem>>, vector<1x128xf32>
    %55 = vector.shape_cast %54 : vector<1x128xf32> to vector<1x128xf32>
    %56 = vector.broadcast %55 : vector<1x128xf32> to vector<8x128xf32>
    %cst_40 = arith.constant 0.000000e+00 : f32
    %57 = vector.broadcast %cst_40 : f32 to vector<8x128xf32>
    %c0_41 = arith.constant 0 : index
    %c0_42 = arith.constant 0 : index
    %58 = vector.load %arg9[%c0_41, %c0_42] : memref<64x384xf32, #tpu.memory_space<vmem>>, vector<8x384xf32>
    %59 = arith.truncf %57 : vector<8x128xf32> to vector<8x128xbf16>
    %cst_43 = arith.constant dense<0.000000e+00> : vector<8x384xf32>
    %60 = tpu.matmul %59, %53, %cst_43 {dimension_numbers = #tpu.dot_dimension_numbers<[1], [0], [0], [1], [0, 0, 1, 1], [], []>} : vector<8x128xbf16>, vector<128x384xbf16>, vector<8x384xf32> -> vector<8x384xf32>
    %61 = vector.extract_strided_slice %58 {offsets = [0, 0], sizes = [8, 128], strides = [1, 1]} : vector<8x384xf32> to vector<8x128xf32>
    %62 = vector.extract_strided_slice %60 {offsets = [0, 0], sizes = [8, 128], strides = [1, 1]} : vector<8x384xf32> to vector<8x128xf32>
    %63 = arith.addf %61, %62 : vector<8x128xf32>
    %64 = arith.negf %63 : vector<8x128xf32>
    %65 = math.exp %64 : vector<8x128xf32>
    %cst_44 = arith.constant 1.000000e+00 : f32
    %66 = vector.broadcast %cst_44 : f32 to vector<8x128xf32>
    %67 = arith.addf %66, %65 : vector<8x128xf32>
    %68 = arith.divf %66, %67 : vector<8x128xf32>
    %69 = vector.extract_strided_slice %58 {offsets = [0, 128], sizes = [8, 128], strides = [1, 1]} : vector<8x384xf32> to vector<8x128xf32>
    %70 = vector.extract_strided_slice %60 {offsets = [0, 128], sizes = [8, 128], strides = [1, 1]} : vector<8x384xf32> to vector<8x128xf32>
    %71 = arith.addf %69, %70 : vector<8x128xf32>
    %72 = arith.negf %71 : vector<8x128xf32>
    %73 = math.exp %72 : vector<8x128xf32>
    %cst_45 = arith.constant 1.000000e+00 : f32
    %74 = vector.broadcast %cst_45 : f32 to vector<8x128xf32>
    %75 = arith.addf %74, %73 : vector<8x128xf32>
    %76 = arith.divf %74, %75 : vector<8x128xf32>
    %77 = vector.extract_strided_slice %58 {offsets = [0, 256], sizes = [8, 128], strides = [1, 1]} : vector<8x384xf32> to vector<8x128xf32>
    %78 = vector.extract_strided_slice %60 {offsets = [0, 256], sizes = [8, 128], strides = [1, 1]} : vector<8x384xf32> to vector<8x128xf32>
    %79 = arith.addf %78, %56 : vector<8x128xf32>
    %80 = arith.mulf %68, %79 : vector<8x128xf32>
    %81 = arith.addf %77, %80 : vector<8x128xf32>
    %82 = math.tanh %81 : vector<8x128xf32>
    %cst_46 = arith.constant 1.000000e+00 : f32
    %83 = vector.broadcast %cst_46 : f32 to vector<8x128xf32>
    %84 = arith.subf %83, %76 : vector<8x128xf32>
    %85 = arith.mulf %84, %82 : vector<8x128xf32>
    %86 = arith.mulf %76, %57 : vector<8x128xf32>
    %87 = arith.addf %85, %86 : vector<8x128xf32>
    %c0_47 = arith.constant 0 : index
    %c0_48 = arith.constant 0 : index
    %88 = vector.load %arg7[%c0_47, %c0_48] : memref<64x128xf32, #tpu.memory_space<vmem>>, vector<8x128xf32>
    tpu.vector_store %arg7[%c0_47, %c0_48], %87 {strides = array<i32>} : memref<64x128xf32, #tpu.memory_space<vmem>>, vector<8x128xf32>,
    %c8_49 = arith.constant 8 : index
    %c0_50 = arith.constant 0 : index
    %89 = vector.load %arg9[%c8_49, %c0_50] : memref<64x384xf32, #tpu.memory_space<vmem>>, vector<8x384xf32>
    %90 = arith.truncf %87 : vector<8x128xf32> to vector<8x128xbf16>
    %cst_51 = arith.constant dense<0.000000e+00> : vector<8x384xf32>
    %91 = tpu.matmul %90, %53, %cst_51 {dimension_numbers = #tpu.dot_dimension_numbers<[1], [0], [0], [1], [0, 0, 1, 1], [], []>} : vector<8x128xbf16>, vector<128x384xbf16>, vector<8x384xf32> -> vector<8x384xf32>
    %92 = vector.extract_strided_slice %89 {offsets = [0, 0], sizes = [8, 128], strides = [1, 1]} : vector<8x384xf32> to vector<8x128xf32>
    %93 = vector.extract_strided_slice %91 {offsets = [0, 0], sizes = [8, 128], strides = [1, 1]} : vector<8x384xf32> to vector<8x128xf32>
    %94 = arith.addf %92, %93 : vector<8x128xf32>
    %95 = arith.negf %94 : vector<8x128xf32>
    %96 = math.exp %95 : vector<8x128xf32>
    %cst_52 = arith.constant 1.000000e+00 : f32
    %97 = vector.broadcast %cst_52 : f32 to vector<8x128xf32>
    %98 = arith.addf %97, %96 : vector<8x128xf32>
    %99 = arith.divf %97, %98 : vector<8x128xf32>
    %100 = vector.extract_strided_slice %89 {offsets = [0, 128], sizes = [8, 128], strides = [1, 1]} : vector<8x384xf32> to vector<8x128xf32>
    %101 = vector.extract_strided_slice %91 {offsets = [0, 128], sizes = [8, 128], strides = [1, 1]} : vector<8x384xf32> to vector<8x128xf32>
    %102 = arith.addf %100, %101 : vector<8x128xf32>
    %103 = arith.negf %102 : vector<8x128xf32>
    %104 = math.exp %103 : vector<8x128xf32>
    %cst_53 = arith.constant 1.000000e+00 : f32
    %105 = vector.broadcast %cst_53 : f32 to vector<8x128xf32>
    %106 = arith.addf %105, %104 : vector<8x128xf32>
    %107 = arith.divf %105, %106 : vector<8x128xf32>
    %108 = vector.extract_strided_slice %89 {offsets = [0, 256], sizes = [8, 128], strides = [1, 1]} : vector<8x384xf32> to vector<8x128xf32>
    %109 = vector.extract_strided_slice %91 {offsets = [0, 256], sizes = [8, 128], strides = [1, 1]} : vector<8x384xf32> to vector<8x128xf32>
    %110 = arith.addf %109, %56 : vector<8x128xf32>
    %111 = arith.mulf %99, %110 : vector<8x128xf32>
    %112 = arith.addf %108, %111 : vector<8x128xf32>
    %113 = math.tanh %112 : vector<8x128xf32>
    %cst_54 = arith.constant 1.000000e+00 : f32
    %114 = vector.broadcast %cst_54 : f32 to vector<8x128xf32>
    %115 = arith.subf %114, %107 : vector<8x128xf32>
    %116 = arith.mulf %115, %113 : vector<8x128xf32>
    %117 = arith.mulf %107, %87 : vector<8x128xf32>
    %118 = arith.addf %116, %117 : vector<8x128xf32>
    %c8_55 = arith.constant 8 : index
    %c0_56 = arith.constant 0 : index
    %119 = vector.load %arg7[%c8_55, %c0_56] : memref<64x128xf32, #tpu.memory_space<vmem>>, vector<8x128xf32>
    tpu.vector_store %arg7[%c8_55, %c0_56], %118 {strides = array<i32>} : memref<64x128xf32, #tpu.memory_space<vmem>>, vector<8x128xf32>,
    %c16_57 = arith.constant 16 : index
    %c0_58 = arith.constant 0 : index
    %120 = vector.load %arg9[%c16_57, %c0_58] : memref<64x384xf32, #tpu.memory_space<vmem>>, vector<8x384xf32>
    %121 = arith.truncf %118 : vector<8x128xf32> to vector<8x128xbf16>
    %cst_59 = arith.constant dense<0.000000e+00> : vector<8x384xf32>
    %122 = tpu.matmul %121, %53, %cst_59 {dimension_numbers = #tpu.dot_dimension_numbers<[1], [0], [0], [1], [0, 0, 1, 1], [], []>} : vector<8x128xbf16>, vector<128x384xbf16>, vector<8x384xf32> -> vector<8x384xf32>
    %123 = vector.extract_strided_slice %120 {offsets = [0, 0], sizes = [8, 128], strides = [1, 1]} : vector<8x384xf32> to vector<8x128xf32>
    %124 = vector.extract_strided_slice %122 {offsets = [0, 0], sizes = [8, 128], strides = [1, 1]} : vector<8x384xf32> to vector<8x128xf32>
    %125 = arith.addf %123, %124 : vector<8x128xf32>
    %126 = arith.negf %125 : vector<8x128xf32>
    %127 = math.exp %126 : vector<8x128xf32>
    %cst_60 = arith.constant 1.000000e+00 : f32
    %128 = vector.broadcast %cst_60 : f32 to vector<8x128xf32>
    %129 = arith.addf %128, %127 : vector<8x128xf32>
    %130 = arith.divf %128, %129 : vector<8x128xf32>
    %131 = vector.extract_strided_slice %120 {offsets = [0, 128], sizes = [8, 128], strides = [1, 1]} : vector<8x384xf32> to vector<8x128xf32>
    %132 = vector.extract_strided_slice %122 {offsets = [0, 128], sizes = [8, 128], strides = [1, 1]} : vector<8x384xf32> to vector<8x128xf32>
    %133 = arith.addf %131, %132 : vector<8x128xf32>
    %134 = arith.negf %133 : vector<8x128xf32>
    %135 = math.exp %134 : vector<8x128xf32>
    %cst_61 = arith.constant 1.000000e+00 : f32
    %136 = vector.broadcast %cst_61 : f32 to vector<8x128xf32>
    %137 = arith.addf %136, %135 : vector<8x128xf32>
    %138 = arith.divf %136, %137 : vector<8x128xf32>
    %139 = vector.extract_strided_slice %120 {offsets = [0, 256], sizes = [8, 128], strides = [1, 1]} : vector<8x384xf32> to vector<8x128xf32>
    %140 = vector.extract_strided_slice %122 {offsets = [0, 256], sizes = [8, 128], strides = [1, 1]} : vector<8x384xf32> to vector<8x128xf32>
    %141 = arith.addf %140, %56 : vector<8x128xf32>
    %142 = arith.mulf %130, %141 : vector<8x128xf32>
    %143 = arith.addf %139, %142 : vector<8x128xf32>
    %144 = math.tanh %143 : vector<8x128xf32>
    %cst_62 = arith.constant 1.000000e+00 : f32
    %145 = vector.broadcast %cst_62 : f32 to vector<8x128xf32>
    %146 = arith.subf %145, %138 : vector<8x128xf32>
    %147 = arith.mulf %146, %144 : vector<8x128xf32>
    %148 = arith.mulf %138, %118 : vector<8x128xf32>
    %149 = arith.addf %147, %148 : vector<8x128xf32>
    %c16_63 = arith.constant 16 : index
    %c0_64 = arith.constant 0 : index
    %150 = vector.load %arg7[%c16_63, %c0_64] : memref<64x128xf32, #tpu.memory_space<vmem>>, vector<8x128xf32>
    tpu.vector_store %arg7[%c16_63, %c0_64], %149 {strides = array<i32>} : memref<64x128xf32, #tpu.memory_space<vmem>>, vector<8x128xf32>,
    %c24_65 = arith.constant 24 : index
    %c0_66 = arith.constant 0 : index
    %151 = vector.load %arg9[%c24_65, %c0_66] : memref<64x384xf32, #tpu.memory_space<vmem>>, vector<8x384xf32>
    %152 = arith.truncf %149 : vector<8x128xf32> to vector<8x128xbf16>
    %cst_67 = arith.constant dense<0.000000e+00> : vector<8x384xf32>
    %153 = tpu.matmul %152, %53, %cst_67 {dimension_numbers = #tpu.dot_dimension_numbers<[1], [0], [0], [1], [0, 0, 1, 1], [], []>} : vector<8x128xbf16>, vector<128x384xbf16>, vector<8x384xf32> -> vector<8x384xf32>
    %154 = vector.extract_strided_slice %151 {offsets = [0, 0], sizes = [8, 128], strides = [1, 1]} : vector<8x384xf32> to vector<8x128xf32>
    %155 = vector.extract_strided_slice %153 {offsets = [0, 0], sizes = [8, 128], strides = [1, 1]} : vector<8x384xf32> to vector<8x128xf32>
    %156 = arith.addf %154, %155 : vector<8x128xf32>
    %157 = arith.negf %156 : vector<8x128xf32>
    %158 = math.exp %157 : vector<8x128xf32>
    %cst_68 = arith.constant 1.000000e+00 : f32
    %159 = vector.broadcast %cst_68 : f32 to vector<8x128xf32>
    %160 = arith.addf %159, %158 : vector<8x128xf32>
    %161 = arith.divf %159, %160 : vector<8x128xf32>
    %162 = vector.extract_strided_slice %151 {offsets = [0, 128], sizes = [8, 128], strides = [1, 1]} : vector<8x384xf32> to vector<8x128xf32>
    %163 = vector.extract_strided_slice %153 {offsets = [0, 128], sizes = [8, 128], strides = [1, 1]} : vector<8x384xf32> to vector<8x128xf32>
    %164 = arith.addf %162, %163 : vector<8x128xf32>
    %165 = arith.negf %164 : vector<8x128xf32>
    %166 = math.exp %165 : vector<8x128xf32>
    %cst_69 = arith.constant 1.000000e+00 : f32
    %167 = vector.broadcast %cst_69 : f32 to vector<8x128xf32>
    %168 = arith.addf %167, %166 : vector<8x128xf32>
    %169 = arith.divf %167, %168 : vector<8x128xf32>
    %170 = vector.extract_strided_slice %151 {offsets = [0, 256], sizes = [8, 128], strides = [1, 1]} : vector<8x384xf32> to vector<8x128xf32>
    %171 = vector.extract_strided_slice %153 {offsets = [0, 256], sizes = [8, 128], strides = [1, 1]} : vector<8x384xf32> to vector<8x128xf32>
    %172 = arith.addf %171, %56 : vector<8x128xf32>
    %173 = arith.mulf %161, %172 : vector<8x128xf32>
    %174 = arith.addf %170, %173 : vector<8x128xf32>
    %175 = math.tanh %174 : vector<8x128xf32>
    %cst_70 = arith.constant 1.000000e+00 : f32
    %176 = vector.broadcast %cst_70 : f32 to vector<8x128xf32>
    %177 = arith.subf %176, %169 : vector<8x128xf32>
    %178 = arith.mulf %177, %175 : vector<8x128xf32>
    %179 = arith.mulf %169, %149 : vector<8x128xf32>
    %180 = arith.addf %178, %179 : vector<8x128xf32>
    %c24_71 = arith.constant 24 : index
    %c0_72 = arith.constant 0 : index
    %181 = vector.load %arg7[%c24_71, %c0_72] : memref<64x128xf32, #tpu.memory_space<vmem>>, vector<8x128xf32>
    tpu.vector_store %arg7[%c24_71, %c0_72], %180 {strides = array<i32>} : memref<64x128xf32, #tpu.memory_space<vmem>>, vector<8x128xf32>,
    %c32_73 = arith.constant 32 : index
    %c0_74 = arith.constant 0 : index
    %182 = vector.load %arg9[%c32_73, %c0_74] : memref<64x384xf32, #tpu.memory_space<vmem>>, vector<8x384xf32>
    %183 = arith.truncf %180 : vector<8x128xf32> to vector<8x128xbf16>
    %cst_75 = arith.constant dense<0.000000e+00> : vector<8x384xf32>
    %184 = tpu.matmul %183, %53, %cst_75 {dimension_numbers = #tpu.dot_dimension_numbers<[1], [0], [0], [1], [0, 0, 1, 1], [], []>} : vector<8x128xbf16>, vector<128x384xbf16>, vector<8x384xf32> -> vector<8x384xf32>
    %185 = vector.extract_strided_slice %182 {offsets = [0, 0], sizes = [8, 128], strides = [1, 1]} : vector<8x384xf32> to vector<8x128xf32>
    %186 = vector.extract_strided_slice %184 {offsets = [0, 0], sizes = [8, 128], strides = [1, 1]} : vector<8x384xf32> to vector<8x128xf32>
    %187 = arith.addf %185, %186 : vector<8x128xf32>
    %188 = arith.negf %187 : vector<8x128xf32>
    %189 = math.exp %188 : vector<8x128xf32>
    %cst_76 = arith.constant 1.000000e+00 : f32
    %190 = vector.broadcast %cst_76 : f32 to vector<8x128xf32>
    %191 = arith.addf %190, %189 : vector<8x128xf32>
    %192 = arith.divf %190, %191 : vector<8x128xf32>
    %193 = vector.extract_strided_slice %182 {offsets = [0, 128], sizes = [8, 128], strides = [1, 1]} : vector<8x384xf32> to vector<8x128xf32>
    %194 = vector.extract_strided_slice %184 {offsets = [0, 128], sizes = [8, 128], strides = [1, 1]} : vector<8x384xf32> to vector<8x128xf32>
    %195 = arith.addf %193, %194 : vector<8x128xf32>
    %196 = arith.negf %195 : vector<8x128xf32>
    %197 = math.exp %196 : vector<8x128xf32>
    %cst_77 = arith.constant 1.000000e+00 : f32
    %198 = vector.broadcast %cst_77 : f32 to vector<8x128xf32>
    %199 = arith.addf %198, %197 : vector<8x128xf32>
    %200 = arith.divf %198, %199 : vector<8x128xf32>
    %201 = vector.extract_strided_slice %182 {offsets = [0, 256], sizes = [8, 128], strides = [1, 1]} : vector<8x384xf32> to vector<8x128xf32>
    %202 = vector.extract_strided_slice %184 {offsets = [0, 256], sizes = [8, 128], strides = [1, 1]} : vector<8x384xf32> to vector<8x128xf32>
    %203 = arith.addf %202, %56 : vector<8x128xf32>
    %204 = arith.mulf %192, %203 : vector<8x128xf32>
    %205 = arith.addf %201, %204 : vector<8x128xf32>
    %206 = math.tanh %205 : vector<8x128xf32>
    %cst_78 = arith.constant 1.000000e+00 : f32
    %207 = vector.broadcast %cst_78 : f32 to vector<8x128xf32>
    %208 = arith.subf %207, %200 : vector<8x128xf32>
    %209 = arith.mulf %208, %206 : vector<8x128xf32>
    %210 = arith.mulf %200, %180 : vector<8x128xf32>
    %211 = arith.addf %209, %210 : vector<8x128xf32>
    %c32_79 = arith.constant 32 : index
    %c0_80 = arith.constant 0 : index
    %212 = vector.load %arg7[%c32_79, %c0_80] : memref<64x128xf32, #tpu.memory_space<vmem>>, vector<8x128xf32>
    tpu.vector_store %arg7[%c32_79, %c0_80], %211 {strides = array<i32>} : memref<64x128xf32, #tpu.memory_space<vmem>>, vector<8x128xf32>,
    %c40_81 = arith.constant 40 : index
    %c0_82 = arith.constant 0 : index
    %213 = vector.load %arg9[%c40_81, %c0_82] : memref<64x384xf32, #tpu.memory_space<vmem>>, vector<8x384xf32>
    %214 = arith.truncf %211 : vector<8x128xf32> to vector<8x128xbf16>
    %cst_83 = arith.constant dense<0.000000e+00> : vector<8x384xf32>
    %215 = tpu.matmul %214, %53, %cst_83 {dimension_numbers = #tpu.dot_dimension_numbers<[1], [0], [0], [1], [0, 0, 1, 1], [], []>} : vector<8x128xbf16>, vector<128x384xbf16>, vector<8x384xf32> -> vector<8x384xf32>
    %216 = vector.extract_strided_slice %213 {offsets = [0, 0], sizes = [8, 128], strides = [1, 1]} : vector<8x384xf32> to vector<8x128xf32>
    %217 = vector.extract_strided_slice %215 {offsets = [0, 0], sizes = [8, 128], strides = [1, 1]} : vector<8x384xf32> to vector<8x128xf32>
    %218 = arith.addf %216, %217 : vector<8x128xf32>
    %219 = arith.negf %218 : vector<8x128xf32>
    %220 = math.exp %219 : vector<8x128xf32>
    %cst_84 = arith.constant 1.000000e+00 : f32
    %221 = vector.broadcast %cst_84 : f32 to vector<8x128xf32>
    %222 = arith.addf %221, %220 : vector<8x128xf32>
    %223 = arith.divf %221, %222 : vector<8x128xf32>
    %224 = vector.extract_strided_slice %213 {offsets = [0, 128], sizes = [8, 128], strides = [1, 1]} : vector<8x384xf32> to vector<8x128xf32>
    %225 = vector.extract_strided_slice %215 {offsets = [0, 128], sizes = [8, 128], strides = [1, 1]} : vector<8x384xf32> to vector<8x128xf32>
    %226 = arith.addf %224, %225 : vector<8x128xf32>
    %227 = arith.negf %226 : vector<8x128xf32>
    %228 = math.exp %227 : vector<8x128xf32>
    %cst_85 = arith.constant 1.000000e+00 : f32
    %229 = vector.broadcast %cst_85 : f32 to vector<8x128xf32>
    %230 = arith.addf %229, %228 : vector<8x128xf32>
    %231 = arith.divf %229, %230 : vector<8x128xf32>
    %232 = vector.extract_strided_slice %213 {offsets = [0, 256], sizes = [8, 128], strides = [1, 1]} : vector<8x384xf32> to vector<8x128xf32>
    %233 = vector.extract_strided_slice %215 {offsets = [0, 256], sizes = [8, 128], strides = [1, 1]} : vector<8x384xf32> to vector<8x128xf32>
    %234 = arith.addf %233, %56 : vector<8x128xf32>
    %235 = arith.mulf %223, %234 : vector<8x128xf32>
    %236 = arith.addf %232, %235 : vector<8x128xf32>
    %237 = math.tanh %236 : vector<8x128xf32>
    %cst_86 = arith.constant 1.000000e+00 : f32
    %238 = vector.broadcast %cst_86 : f32 to vector<8x128xf32>
    %239 = arith.subf %238, %231 : vector<8x128xf32>
    %240 = arith.mulf %239, %237 : vector<8x128xf32>
    %241 = arith.mulf %231, %211 : vector<8x128xf32>
    %242 = arith.addf %240, %241 : vector<8x128xf32>
    %c40_87 = arith.constant 40 : index
    %c0_88 = arith.constant 0 : index
    %243 = vector.load %arg7[%c40_87, %c0_88] : memref<64x128xf32, #tpu.memory_space<vmem>>, vector<8x128xf32>
    tpu.vector_store %arg7[%c40_87, %c0_88], %242 {strides = array<i32>} : memref<64x128xf32, #tpu.memory_space<vmem>>, vector<8x128xf32>,
    %c48_89 = arith.constant 48 : index
    %c0_90 = arith.constant 0 : index
    %244 = vector.load %arg9[%c48_89, %c0_90] : memref<64x384xf32, #tpu.memory_space<vmem>>, vector<8x384xf32>
    %245 = arith.truncf %242 : vector<8x128xf32> to vector<8x128xbf16>
    %cst_91 = arith.constant dense<0.000000e+00> : vector<8x384xf32>
    %246 = tpu.matmul %245, %53, %cst_91 {dimension_numbers = #tpu.dot_dimension_numbers<[1], [0], [0], [1], [0, 0, 1, 1], [], []>} : vector<8x128xbf16>, vector<128x384xbf16>, vector<8x384xf32> -> vector<8x384xf32>
    %247 = vector.extract_strided_slice %244 {offsets = [0, 0], sizes = [8, 128], strides = [1, 1]} : vector<8x384xf32> to vector<8x128xf32>
    %248 = vector.extract_strided_slice %246 {offsets = [0, 0], sizes = [8, 128], strides = [1, 1]} : vector<8x384xf32> to vector<8x128xf32>
    %249 = arith.addf %247, %248 : vector<8x128xf32>
    %250 = arith.negf %249 : vector<8x128xf32>
    %251 = math.exp %250 : vector<8x128xf32>
    %cst_92 = arith.constant 1.000000e+00 : f32
    %252 = vector.broadcast %cst_92 : f32 to vector<8x128xf32>
    %253 = arith.addf %252, %251 : vector<8x128xf32>
    %254 = arith.divf %252, %253 : vector<8x128xf32>
    %255 = vector.extract_strided_slice %244 {offsets = [0, 128], sizes = [8, 128], strides = [1, 1]} : vector<8x384xf32> to vector<8x128xf32>
    %256 = vector.extract_strided_slice %246 {offsets = [0, 128], sizes = [8, 128], strides = [1, 1]} : vector<8x384xf32> to vector<8x128xf32>
    %257 = arith.addf %255, %256 : vector<8x128xf32>
    %258 = arith.negf %257 : vector<8x128xf32>
    %259 = math.exp %258 : vector<8x128xf32>
    %cst_93 = arith.constant 1.000000e+00 : f32
    %260 = vector.broadcast %cst_93 : f32 to vector<8x128xf32>
    %261 = arith.addf %260, %259 : vector<8x128xf32>
    %262 = arith.divf %260, %261 : vector<8x128xf32>
    %263 = vector.extract_strided_slice %244 {offsets = [0, 256], sizes = [8, 128], strides = [1, 1]} : vector<8x384xf32> to vector<8x128xf32>
    %264 = vector.extract_strided_slice %246 {offsets = [0, 256], sizes = [8, 128], strides = [1, 1]} : vector<8x384xf32> to vector<8x128xf32>
    %265 = arith.addf %264, %56 : vector<8x128xf32>
    %266 = arith.mulf %254, %265 : vector<8x128xf32>
    %267 = arith.addf %263, %266 : vector<8x128xf32>
    %268 = math.tanh %267 : vector<8x128xf32>
    %cst_94 = arith.constant 1.000000e+00 : f32
    %269 = vector.broadcast %cst_94 : f32 to vector<8x128xf32>
    %270 = arith.subf %269, %262 : vector<8x128xf32>
    %271 = arith.mulf %270, %268 : vector<8x128xf32>
    %272 = arith.mulf %262, %242 : vector<8x128xf32>
    %273 = arith.addf %271, %272 : vector<8x128xf32>
    %c48_95 = arith.constant 48 : index
    %c0_96 = arith.constant 0 : index
    %274 = vector.load %arg7[%c48_95, %c0_96] : memref<64x128xf32, #tpu.memory_space<vmem>>, vector<8x128xf32>
    tpu.vector_store %arg7[%c48_95, %c0_96], %273 {strides = array<i32>} : memref<64x128xf32, #tpu.memory_space<vmem>>, vector<8x128xf32>,
    %c56_97 = arith.constant 56 : index
    %c0_98 = arith.constant 0 : index
    %275 = vector.load %arg9[%c56_97, %c0_98] : memref<64x384xf32, #tpu.memory_space<vmem>>, vector<8x384xf32>
    %276 = arith.truncf %273 : vector<8x128xf32> to vector<8x128xbf16>
    %cst_99 = arith.constant dense<0.000000e+00> : vector<8x384xf32>
    %277 = tpu.matmul %276, %53, %cst_99 {dimension_numbers = #tpu.dot_dimension_numbers<[1], [0], [0], [1], [0, 0, 1, 1], [], []>} : vector<8x128xbf16>, vector<128x384xbf16>, vector<8x384xf32> -> vector<8x384xf32>
    %278 = vector.extract_strided_slice %275 {offsets = [0, 0], sizes = [8, 128], strides = [1, 1]} : vector<8x384xf32> to vector<8x128xf32>
    %279 = vector.extract_strided_slice %277 {offsets = [0, 0], sizes = [8, 128], strides = [1, 1]} : vector<8x384xf32> to vector<8x128xf32>
    %280 = arith.addf %278, %279 : vector<8x128xf32>
    %281 = arith.negf %280 : vector<8x128xf32>
    %282 = math.exp %281 : vector<8x128xf32>
    %cst_100 = arith.constant 1.000000e+00 : f32
    %283 = vector.broadcast %cst_100 : f32 to vector<8x128xf32>
    %284 = arith.addf %283, %282 : vector<8x128xf32>
    %285 = arith.divf %283, %284 : vector<8x128xf32>
    %286 = vector.extract_strided_slice %275 {offsets = [0, 128], sizes = [8, 128], strides = [1, 1]} : vector<8x384xf32> to vector<8x128xf32>
    %287 = vector.extract_strided_slice %277 {offsets = [0, 128], sizes = [8, 128], strides = [1, 1]} : vector<8x384xf32> to vector<8x128xf32>
    %288 = arith.addf %286, %287 : vector<8x128xf32>
    %289 = arith.negf %288 : vector<8x128xf32>
    %290 = math.exp %289 : vector<8x128xf32>
    %cst_101 = arith.constant 1.000000e+00 : f32
    %291 = vector.broadcast %cst_101 : f32 to vector<8x128xf32>
    %292 = arith.addf %291, %290 : vector<8x128xf32>
    %293 = arith.divf %291, %292 : vector<8x128xf32>
    %294 = vector.extract_strided_slice %275 {offsets = [0, 256], sizes = [8, 128], strides = [1, 1]} : vector<8x384xf32> to vector<8x128xf32>
    %295 = vector.extract_strided_slice %277 {offsets = [0, 256], sizes = [8, 128], strides = [1, 1]} : vector<8x384xf32> to vector<8x128xf32>
    %296 = arith.addf %295, %56 : vector<8x128xf32>
    %297 = arith.mulf %285, %296 : vector<8x128xf32>
    %298 = arith.addf %294, %297 : vector<8x128xf32>
    %299 = math.tanh %298 : vector<8x128xf32>
    %cst_102 = arith.constant 1.000000e+00 : f32
    %300 = vector.broadcast %cst_102 : f32 to vector<8x128xf32>
    %301 = arith.subf %300, %293 : vector<8x128xf32>
    %302 = arith.mulf %301, %299 : vector<8x128xf32>
    %303 = arith.mulf %293, %273 : vector<8x128xf32>
    %304 = arith.addf %302, %303 : vector<8x128xf32>
    %c56_103 = arith.constant 56 : index
    %c0_104 = arith.constant 0 : index
    %305 = vector.load %arg7[%c56_103, %c0_104] : memref<64x128xf32, #tpu.memory_space<vmem>>, vector<8x128xf32>
    tpu.vector_store %arg7[%c56_103, %c0_104], %304 {strides = array<i32>} : memref<64x128xf32, #tpu.memory_space<vmem>>, vector<8x128xf32>,
    %c0_105 = arith.constant 0 : index
    %c0_106 = arith.constant 0 : index
    %306 = vector.load %arg7[%c0_105, %c0_106] : memref<64x128xf32, #tpu.memory_space<vmem>>, vector<8x128xf32>
    %c56_107 = arith.constant 56 : index
    %c0_108 = arith.constant 0 : index
    %307 = vector.load %arg7[%c56_107, %c0_108] : memref<64x128xf32, #tpu.memory_space<vmem>>, vector<8x128xf32>
    %308 = arith.select %9, %306, %307 : vector<8x128xi1>, vector<8x128xf32>
    %c0_109 = arith.constant 0 : index
    %c0_110 = arith.constant 0 : index
    %309 = vector.load %arg7[%c0_109, %c0_110] : memref<64x128xf32, #tpu.memory_space<vmem>>, vector<8x128xf32>
    tpu.vector_store %arg7[%c0_109, %c0_110], %308 {strides = array<i32>} : memref<64x128xf32, #tpu.memory_space<vmem>>, vector<8x128xf32>,
    %310 = arith.select %9, %307, %306 : vector<8x128xi1>, vector<8x128xf32>
    %c56_111 = arith.constant 56 : index
    %c0_112 = arith.constant 0 : index
    %311 = vector.load %arg7[%c56_111, %c0_112] : memref<64x128xf32, #tpu.memory_space<vmem>>, vector<8x128xf32>
    tpu.vector_store %arg7[%c56_111, %c0_112], %310 {strides = array<i32>} : memref<64x128xf32, #tpu.memory_space<vmem>>, vector<8x128xf32>,
    %c8_113 = arith.constant 8 : index
    %c0_114 = arith.constant 0 : index
    %312 = vector.load %arg7[%c8_113, %c0_114] : memref<64x128xf32, #tpu.memory_space<vmem>>, vector<8x128xf32>
    %c48_115 = arith.constant 48 : index
    %c0_116 = arith.constant 0 : index
    %313 = vector.load %arg7[%c48_115, %c0_116] : memref<64x128xf32, #tpu.memory_space<vmem>>, vector<8x128xf32>
    %314 = arith.select %9, %312, %313 : vector<8x128xi1>, vector<8x128xf32>
    %c8_117 = arith.constant 8 : index
    %c0_118 = arith.constant 0 : index
    %315 = vector.load %arg7[%c8_117, %c0_118] : memref<64x128xf32, #tpu.memory_space<vmem>>, vector<8x128xf32>
    tpu.vector_store %arg7[%c8_117, %c0_118], %314 {strides = array<i32>} : memref<64x128xf32, #tpu.memory_space<vmem>>, vector<8x128xf32>,
    %316 = arith.select %9, %313, %312 : vector<8x128xi1>, vector<8x128xf32>
    %c48_119 = arith.constant 48 : index
    %c0_120 = arith.constant 0 : index
    %317 = vector.load %arg7[%c48_119, %c0_120] : memref<64x128xf32, #tpu.memory_space<vmem>>, vector<8x128xf32>
    tpu.vector_store %arg7[%c48_119, %c0_120], %316 {strides = array<i32>} : memref<64x128xf32, #tpu.memory_space<vmem>>, vector<8x128xf32>,
    %c16_121 = arith.constant 16 : index
    %c0_122 = arith.constant 0 : index
    %318 = vector.load %arg7[%c16_121, %c0_122] : memref<64x128xf32, #tpu.memory_space<vmem>>, vector<8x128xf32>
    %c40_123 = arith.constant 40 : index
    %c0_124 = arith.constant 0 : index
    %319 = vector.load %arg7[%c40_123, %c0_124] : memref<64x128xf32, #tpu.memory_space<vmem>>, vector<8x128xf32>
    %320 = arith.select %9, %318, %319 : vector<8x128xi1>, vector<8x128xf32>
    %c16_125 = arith.constant 16 : index
    %c0_126 = arith.constant 0 : index
    %321 = vector.load %arg7[%c16_125, %c0_126] : memref<64x128xf32, #tpu.memory_space<vmem>>, vector<8x128xf32>
    tpu.vector_store %arg7[%c16_125, %c0_126], %320 {strides = array<i32>} : memref<64x128xf32, #tpu.memory_space<vmem>>, vector<8x128xf32>,
    %322 = arith.select %9, %319, %318 : vector<8x128xi1>, vector<8x128xf32>
    %c40_127 = arith.constant 40 : index
    %c0_128 = arith.constant 0 : index
    %323 = vector.load %arg7[%c40_127, %c0_128] : memref<64x128xf32, #tpu.memory_space<vmem>>, vector<8x128xf32>
    tpu.vector_store %arg7[%c40_127, %c0_128], %322 {strides = array<i32>} : memref<64x128xf32, #tpu.memory_space<vmem>>, vector<8x128xf32>,
    %c24_129 = arith.constant 24 : index
    %c0_130 = arith.constant 0 : index
    %324 = vector.load %arg7[%c24_129, %c0_130] : memref<64x128xf32, #tpu.memory_space<vmem>>, vector<8x128xf32>
    %c32_131 = arith.constant 32 : index
    %c0_132 = arith.constant 0 : index
    %325 = vector.load %arg7[%c32_131, %c0_132] : memref<64x128xf32, #tpu.memory_space<vmem>>, vector<8x128xf32>
    %326 = arith.select %9, %324, %325 : vector<8x128xi1>, vector<8x128xf32>
    %c24_133 = arith.constant 24 : index
    %c0_134 = arith.constant 0 : index
    %327 = vector.load %arg7[%c24_133, %c0_134] : memref<64x128xf32, #tpu.memory_space<vmem>>, vector<8x128xf32>
    tpu.vector_store %arg7[%c24_133, %c0_134], %326 {strides = array<i32>} : memref<64x128xf32, #tpu.memory_space<vmem>>, vector<8x128xf32>,
    %328 = arith.select %9, %325, %324 : vector<8x128xi1>, vector<8x128xf32>
    %c32_135 = arith.constant 32 : index
    %c0_136 = arith.constant 0 : index
    %329 = vector.load %arg7[%c32_135, %c0_136] : memref<64x128xf32, #tpu.memory_space<vmem>>, vector<8x128xf32>
    tpu.vector_store %arg7[%c32_135, %c0_136], %328 {strides = array<i32>} : memref<64x128xf32, #tpu.memory_space<vmem>>, vector<8x128xf32>,
    %330 = arith.truncf %304 : vector<8x128xf32> to vector<8x128xbf16>
    %c0_137 = arith.constant 0 : index
    %c0_138 = arith.constant 0 : index
    %331 = vector.load %arg5[%c0_137, %c0_138] : memref<128x32xbf16, #tpu.memory_space<vmem>>, vector<128x32xbf16>
    %cst_139 = arith.constant dense<0.000000e+00> : vector<8x32xf32>
    %332 = tpu.matmul %330, %331, %cst_139 {dimension_numbers = #tpu.dot_dimension_numbers<[1], [0], [0], [1], [0, 0, 1, 1], [], []>} : vector<8x128xbf16>, vector<128x32xbf16>, vector<8x32xf32> -> vector<8x32xf32>
    %c0_140 = arith.constant 0 : index
    %c0_141 = arith.constant 0 : index
    %333 = vector.load %arg6[%c0_140, %c0_141] : memref<1x32xf32, #tpu.memory_space<vmem>>, vector<1x32xf32>
    %334 = vector.broadcast %333 : vector<1x32xf32> to vector<8x32xf32>
    %335 = arith.addf %332, %334 : vector<8x32xf32>
    %336 = math.tanh %335 : vector<8x32xf32>
    %c0_142 = arith.constant 0 : index
    %c0_143 = arith.constant 0 : index
    %337 = vector.load %arg8[%c0_142, %c0_143] : memref<8x32xf32, #tpu.memory_space<vmem>>, vector<8x32xf32>
    tpu.vector_store %arg8[%c0_142, %c0_143], %336 {strides = array<i32>} : memref<8x32xf32, #tpu.memory_space<vmem>>, vector<8x32xf32>,
    return
  }
}

</mosaic_0001>

<bundles_post_ra>
// kernel: encoder_forward.1
= control target key start
LH: loop header
LB: loop body
LE: loop exit
PB: predicated region body
PF: predicated region fallthrough
CT: control target
= control target key end

     0   :  { %14 = vsyncpa [#allocation4], 0  ;;  %v3142_v2 = vmov 0   ;;  %vm116_vm0 = vcmask 261120   ;;  %v3144_v17 = vmov 0.0   ;;  %vm2167_vm1 = vmmov 0   ;;  %s3133_s0 = inlined_call_operand.vmem [shape: bf16[64,32], index: 0, kind: input, shape index: {}]   ;;  %s3134_s1 = inlined_call_operand.vmem [shape: bf16[32,384], index: 1, kind: input, shape index: {}]   ;;  %s3135_s2 = inlined_call_operand.vmem [shape: f32[1,384], index: 2, kind: input, shape index: {}]   ;;  %s3136_s3 = inlined_call_operand.vmem [shape: bf16[128,384], index: 3, kind: input, shape index: {}]   ;;  %s3137_s4 = inlined_call_operand.vmem [shape: f32[1,128], index: 4, kind: input, shape index: {}]   ;;  %s3138_s5 = inlined_call_operand.vmem [shape: bf16[128,32], index: 5, kind: input, shape index: {}]   ;;  %s3139_s6 = inlined_call_operand.vmem [shape: f32[1,32], index: 6, kind: input, shape index: {}]   ;;  %s3140_s7 = inlined_call_operand.hbm [shape: f32[64,128], index: 7, kind: output, shape index: {0}]   ;;  %s3141_s8 = inlined_call_operand.hbm [shape: f32[8,32], index: 8, kind: output, shape index: {1}]  }
   0x1   :  { %v1959_v0 = vld [vmem:[%s3134_s1 + $0x4] ss:$12 sps:$4 sm:$0xff]   ;;  %v1961_v1 = vld [vmem:[%s3134_s1] ss:$12 sps:$4 sm:$0xff]   ;;  %161 = vmatprep.mubr.bf16.mxu0 %v3142_v2  ;;  %v1962_v3 = vld [vmem:[%s3134_s1 + $0x1c] ss:$12 sps:$4 sm:$0xff]  }
   0x2   :  { %129 = vmatprep.subr.bf16.mxu0 %v1959_v0  ;;  %v1964_v4 = vld [vmem:[%s3134_s1 + $0x18] ss:$12 sps:$4 sm:$0xff]   ;;  %v2242_v7 = vld [vmem:[%s3136_s3] ss:$12 sps:$4 sm:$0xff]   ;;  %v2248_v8 = vld [vmem:[%s3136_s3 + $0x1c] ss:$12 sps:$4 sm:$0xff]  }
   0x3   :  { %130 = vmatpush1.bf16.msra.mxu0 %v1961_v1  ;;  %v1965_v5 = vld [vmem:[%s3133_s0] sm:$0xff]   ;;  %v1975_v9 = vld [vmem:[%s3134_s1 + $0x8] ss:$12 sps:$4 sm:$0xff]   ;;  %v2277_v14 = vld [vmem:[%s3136_s3 + $0x30] ss:$12 sps:$4 sm:$0xff]  }
   0x4   :  { %131 = vmatprep.subr.bf16.mxu0 %v1962_v3  ;;  %v2236_v6 = vld [vmem:[%s3136_s3 + $0x4] ss:$12 sps:$4 sm:$0xff]   ;;  %1764 = vmatprep.mubr.msk.bf16.mxu1 %vm116_vm0, %v1965_v5  ;;  %v1979_v11 = vld [vmem:[%s3134_s1 + $0x20] ss:$12 sps:$4 sm:$0xff]   ;;  %v2288_v16 = vld [vmem:[%s3136_s3 + $0x48] ss:$12 sps:$4 sm:$0xff]  }
   0x5   :  { %v2258_v10 = vld [vmem:[%s3136_s3 + $0x18] ss:$12 sps:$4 sm:$0xff]   ;;  %v2268_v12 = vld [vmem:[%s3136_s3 + $0x34] ss:$12 sps:$4 sm:$0xff]   ;;  %1760 = vmatprep.subr.bf16.mxu1 %v1975_v9  ;;  %v1972_v13 = vld [vmem:[%s3133_s0 + $0x8] sm:$0xff]  }
   0x6   :  { %1761 = vmatpush3.bf16.msra.mxu1 %v1975_v9  ;;  %v2283_v15 = vld [vmem:[%s3136_s3 + $0x4c] ss:$12 sps:$4 sm:$0xff]   ;;  %v2295_v18 = vld [vmem:[%s3136_s3 + $0x8] ss:$12 sps:$4 sm:$0xff]   ;;  %v2306_v20 = vld [vmem:[%s3136_s3 + $0x64] ss:$12 sps:$4 sm:$0xff]  }
   0x7   :  { %132 = vmatpush1.bf16.msra.mxu0 %v1964_v4  ;;  %1762 = vmatprep.subr.bf16.mxu1 %v1979_v11  ;;  %v1981_v19 = vld [vmem:[%s3133_s0 + $0x10] sm:$0xff]   ;;  %v2314_v21 = vld [vmem:[%s3136_s3 + $0x20] ss:$12 sps:$4 sm:$0xff]   ;;  %v2326_v23 = vld [vmem:[%s3136_s3 + $0x7c] ss:$12 sps:$4 sm:$0xff]  }
   0x8   :  { %577 = vmatprep.subr.bf16.mxu0 %v2236_v6  ;;  %v2319_v22 = vld [vmem:[%s3136_s3 + $0x60] ss:$12 sps:$4 sm:$0xff]   ;;  %v1988_v24 = vld [vmem:[%s3133_s0 + $0x18] sm:$0xff]   ;;  %v2379_v31 = vld [vmem:[%s3136_s3 + $0x68] ss:$12 sps:$4 sm:$0xff]  }
   0x9   :  { %v2336_v25 = vld [vmem:[%s3136_s3 + $0x38] ss:$12 sps:$4 sm:$0xff]   ;;  %v2350_v27 = vld [vmem:[%s3136_s3 + $0x94] ss:$12 sps:$4 sm:$0xff]   ;;  %v2355_v28 = vld [vmem:[%s3136_s3 + $0x50] ss:$12 sps:$4 sm:$0xff]  }
   0xa   :  { %1615 = vmatmul.mubr.msk.bf16.vlgmr.msra.gmra.mrb[0].mxu0 %vm116_vm0, %v1965_v5  ;;  %1763 = vmatpush3.bf16.msra.mxu1 %v1979_v11  ;;  %v2342_v26 = vld [vmem:[%s3136_s3 + $0x78] ss:$12 sps:$4 sm:$0xff]   ;;  %v2362_v29 = vld [vmem:[%s3136_s3 + $0x90] ss:$12 sps:$4 sm:$0xff]  }
   0xb   :  { %578 = vmatpush1.bf16.msra.mxu0 %v2242_v7  ;;  %171 = vmatprep.mubr.bf16.mxu0 %v3142_v2  ;;  %v2370_v30 = vld [vmem:[%s3136_s3 + $0xac] ss:$12 sps:$4 sm:$0xff]  }
   0xc   :  { %579 = vmatprep.subr.bf16.mxu0 %v2248_v8  ;;  %1772 = vmatprep.subr.bf16.mxu1 %v3144_v17 }
   0xd   :  { %1765 = vmatmul.mubr.msk.bf16.vlgmr.msra.gmra.mrb[0].mxu1 %vm116_vm0, %v1972_v13 }
   0xe   :  { %1768 = vmatprep.mubr.msk.bf16.mxu1 %vm116_vm0, %v1981_v19  ;;  %1773 = vmatpush3.bf16.msra.mxu1 %v2295_v18 }
   0xf   :  { %580 = vmatpush1.bf16.msra.mxu0 %v2258_v10  ;;  %1774 = vmatprep.subr.bf16.mxu1 %v3144_v17 }
  0x10   :  { %581 = vmatprep.subr.bf16.mxu0 %v2268_v12 }
  0x12   :  { %1616 = vmatmul.mubr.msk.bf16.gmra.mrb[4].mxu0 %vm116_vm0, %v1972_v13  ;;  %1775 = vmatpush3.bf16.msra.mxu1 %v2314_v21 }
  0x13   :  { %582 = vmatpush1.bf16.msra.mxu0 %v2277_v14  ;;  %181 = vmatprep.mubr.bf16.mxu0 %v3142_v2 }
  0x14   :  { %583 = vmatprep.subr.bf16.mxu0 %v2283_v15  ;;  %1776 = vmatprep.subr.bf16.mxu1 %v3144_v17 }
  0x15   :  { %1769 = vmatmul.mubr.msk.bf16.gmra.mrb[4].mxu1 %vm116_vm0, %v1988_v24 }
  0x16   :  { %1777 = vmatpush3.bf16.msra.mxu1 %v2336_v25  ;;  %1788 = vmatprep.mubr.msk.bf16.mxu1 %vm2167_vm1, %v3144_v17 }
  0x17   :  { %584 = vmatpush1.bf16.msra.mxu0 %v2288_v16  ;;  %1778 = vmatprep.subr.bf16.mxu1 %v3144_v17 }
  0x18   :  { %585 = vmatprep.subr.bf16.mxu0 %v2306_v20 }
  0x1a   :  { %1617 = vmatmul.mubr.msk.bf16.gmra.mrb[8].mxu0 %vm116_vm0, %v1981_v19  ;;  %1779 = vmatpush3.bf16.msra.mxu1 %v2355_v28 }
  0x1b   :  { %586 = vmatpush1.bf16.msra.mxu0 %v2319_v22  ;;  %191 = vmatprep.mubr.bf16.mxu0 %v3142_v2 }
  0x1c   :  { %587 = vmatprep.subr.bf16.mxu0 %v2326_v23 }
  0x1f   :  { %588 = vmatpush1.bf16.msra.mxu0 %v2342_v26 }
  0x20   :  { %589 = vmatprep.subr.bf16.mxu0 %v2350_v27 }
  0x21   :  { %15 = vsyncpa [#allocation6], 0  ;;  %1780 = vmatprep.subr.bf16.mxu1 %v3144_v17  ;;  %v2387_v32 = vld [vmem:[%s3136_s3 + $0xa8] ss:$12 sps:$4 sm:$0xff]   ;;  %v2395_v33 = vld [vmem:[%s3136_s3 + $0x80] ss:$12 sps:$4 sm:$0xff]   ;;  %v49_v36 = vlaneseq }
  0x22   :  { %1618 = vmatmul.mubr.msk.bf16.gmra.mrb[12].mxu0 %vm116_vm0, %v1988_v24  ;;  %1781 = vmatpush3.bf16.msra.mxu1 %v2379_v31  ;;  %v2404_v34 = vld [vmem:[%s3136_s3 + $0x98] ss:$12 sps:$4 sm:$0xff]   ;;  %v2415_v35 = vld [vmem:[%s3136_s3 + $0xb0] ss:$12 sps:$4 sm:$0xff]   ;;  %v47_v39 = vld [vmem:[%s3135_s2] sm:$0x7] }
  0x23   :  { %590 = vmatpush1.bf16.msra.mxu0 %v2362_v29  ;;  %609 = vmatprep.mubr.bf16.mxu0 %v3142_v2  ;;  %v50_v37 = vshrl.u32 %v49_v36, 7  ;;  %v2470_v50 = vand.u32 127, %v49_v36 }
  0x24   :  { %591 = vmatprep.subr.bf16.mxu0 %v2370_v30  ;;  %1782 = vmatprep.subr.bf16.mxu1 %v3144_v17 }
  0x25   :  { %v51_v38 = vsub.s32 0, %v50_v37  ;;  %v55_v40 = vsub.s32 1, %v50_v37  ;;  %v59_v48 = vsub.s32 2, %v50_v37  ;;  %v294_v55 = vadd.s32 128, %v2470_v50 }
  0x26   :  { %1783 = vmatpush3.bf16.msra.mxu1 %v2395_v33  ;;  %v295_v59 = vadd.s32 256, %v2470_v50  ;;  %vm293_vm2 = vcmp.lt.s32.totalorder %v2470_v50, 32 }
  0x27   :  { %592 = vmatpush1.bf16.msra.mxu0 %v2387_v32  ;;  %1784 = vmatprep.subr.bf16.mxu1 %v3144_v17  ;;  %v2458_v42 = vrot.slane %v47_v39, %v51_v38  ;;  %v2462_v44 = vrot.slane %v47_v39, %v55_v40  ;;  %v60_v51 = vrot.slane %v47_v39, %v59_v48  ;;  %v307_v5 = vand.u32 127, %v294_v55 }
  0x28   :  { %685 = vmatprep.subr.bf16.mxu0 %v2236_v6  ;;  %v314_v11 = vand.u32 127, %v295_v59 }
  0x29   :  { %vm2490_vm3 = vcmp.lt.s32.totalorder %v307_v5, 32 }
  0x2a   :  { %610 = vmatmul.mubr.bf16.vlgmr.msra.gmra.mrb[16].mxu0 %v3142_v2  ;;  %1785 = vmatpush3.bf16.msra.mxu1 %v2404_v34  ;;  %vm2499_vm4 = vcmp.lt.s32.totalorder %v314_v11, 32 }
  0x2b   :  { %686 = vmatpush1.bf16.msra.mxu0 %v2242_v7  ;;  %717 = vmatprep.mubr.bf16.mxu0 %v3142_v2 }
  0x2c   :  { %687 = vmatprep.subr.bf16.mxu0 %v2248_v8  ;;  %1786 = vmatprep.subr.bf16.mxu1 %v3144_v17 }
  0x2e   :  { %1787 = vmatpush3.bf16.msra.mxu1 %v2415_v35 }
  0x2f   :  { %688 = vmatpush1.bf16.msra.mxu0 %v2258_v10  ;;  %1792 = vmatprep.subr.bf16.mxu1 %v3144_v17 }
  0x30   :  { %689 = vmatprep.subr.bf16.mxu0 %v2268_v12 }
  0x31   :  { %1789 = vmatmul.mubr.bf16.vlgmr.msra.gmra.mrb[8].mxu1 %v3142_v2 }
  0x32   :  { %1793 = vmatpush3.bf16.msra.mxu1 %v2295_v18  ;;  %1808 = vmatprep.mubr.msk.bf16.mxu1 %vm2167_vm1, %v3144_v17 }
  0x33   :  { %690 = vmatpush1.bf16.msra.mxu0 %v2277_v14  ;;  %1794 = vmatprep.subr.bf16.mxu1 %v3144_v17 }
  0x34   :  { %691 = vmatprep.subr.bf16.mxu0 %v2283_v15 }
  0x36   :  { %1795 = vmatpush3.bf16.msra.mxu1 %v2314_v21 }
  0x37   :  { %692 = vmatpush1.bf16.msra.mxu0 %v2288_v16  ;;  %1796 = vmatprep.subr.bf16.mxu1 %v3144_v17 }
  0x38   :  { %693 = vmatprep.subr.bf16.mxu0 %v2306_v20 }
  0x3a   :  { %1797 = vmatpush3.bf16.msra.mxu1 %v2336_v25 }
  0x3b   :  { %694 = vmatpush1.bf16.msra.mxu0 %v2319_v22  ;;  %1798 = vmatprep.subr.bf16.mxu1 %v3144_v17 }
  0x3c   :  { %695 = vmatprep.subr.bf16.mxu0 %v2326_v23 }
  0x3e   :  { %1799 = vmatpush3.bf16.msra.mxu1 %v2355_v28 }
  0x3f   :  { %696 = vmatpush1.bf16.msra.mxu0 %v2342_v26  ;;  %1800 = vmatprep.subr.bf16.mxu1 %v3144_v17 }
  0x40   :  { %697 = vmatprep.subr.bf16.mxu0 %v2350_v27 }
  0x42   :  { %1801 = vmatpush3.bf16.msra.mxu1 %v2379_v31 }
  0x43   :  { %698 = vmatpush1.bf16.msra.mxu0 %v2362_v29  ;;  %1802 = vmatprep.subr.bf16.mxu1 %v3144_v17 }
  0x44   :  { %699 = vmatprep.subr.bf16.mxu0 %v2370_v30 }
  0x46   :  { %1803 = vmatpush3.bf16.msra.mxu1 %v2395_v33 }
  0x47   :  { %700 = vmatpush1.bf16.msra.mxu0 %v2387_v32  ;;  %1804 = vmatprep.subr.bf16.mxu1 %v3144_v17 }
  0x48   :  { %793 = vmatprep.subr.bf16.mxu0 %v2236_v6 }
  0x4a   :  { %1805 = vmatpush3.bf16.msra.mxu1 %v2404_v34 }
  0x4b   :  { %1806 = vmatprep.subr.bf16.mxu1 %v3144_v17 }
  0x4e   :  { %1807 = vmatpush3.bf16.msra.mxu1 %v2415_v35 }
  0x4f   :  { %1812 = vmatprep.subr.bf16.mxu1 %v3144_v17 }
  0xdd   :  { %v2456_v41 = vpop.f32.mrb[0].mxu0 }
  0xde   :  { %v2460_v43 = vpop.f32.mrb[1].mxu0 }
  0xdf   :  { %v167_v45 = vpop.f32.mrb[2].mxu0 }
  0xe0   :  { %v2465_v46 = vadd.f32 %v167_v45, %v2458_v42  ;;  %v169_v47 = vpop.f32.mrb[3].mxu0  ;;  %v1766_v58 = vpop.f32.mrb[0].mxu1 }
  0xe1   :  { %v2468_v49 = vadd.f32 %v169_v47, %v2462_v44  ;;  %v2479_v62 = vadd.f32 %v1766_v58, %v60_v51  ;;  %v236_v63 = vpop.f32.mrb[1].mxu1 }
  0xe2   :  { %v1767_v1 = vpop.f32.mrb[2].mxu1  ;;  %v2497_v39 = vadd.f32 %v236_v63, %v60_v51 }
  0xe3   :  { %v2484_v3 = vadd.f32 %v1767_v1, %v60_v51  ;;  %v239_v4 = vpop.f32.mrb[3].mxu1 }
  0xe4   :  { %v2486_v9 = vadd.f32 %v239_v4, %v60_v51  ;;  %3152 = vst [vmem:[#allocation9_spill] sm:$0xff] %v2497_v39 }
  0xe5   :  { %v173_v52 = vpop.f32.mrb[4].mxu0 }
  0xe6   :  { %v174_v53 = vadd.f32 %v173_v52, %v2458_v42  ;;  %v175_v54 = vpop.f32.mrb[5].mxu0 }
  0xe7   :  { %v2475_v56 = vadd.f32 %v175_v54, %v2462_v44  ;;  %v177_v57 = vpop.f32.mrb[6].mxu0 }
  0xe8   :  { %v178_v60 = vadd.f32 %v177_v57, %v2458_v42  ;;  %v179_v61 = vpop.f32.mrb[7].mxu0  ;;  %v1770_v40 = vpop.f32.mrb[4].mxu1 }
  0xe9   :  { %v2482_v0 = vadd.f32 %v179_v61, %v2462_v44  ;;  %v2504_v52 = vadd.f32 %v1770_v40, %v60_v51  ;;  %v252_v54 = vpop.f32.mrb[5].mxu1 }
  0xea   :  { %v2517_v59 = vadd.f32 %v252_v54, %v60_v51  ;;  %v1771_v61 = vpop.f32.mrb[6].mxu1 }
  0xeb   :  { %v2535_v5 = vadd.f32 %v1771_v61, %v60_v51  ;;  %v255_v11 = vpop.f32.mrb[7].mxu1 }
  0xed   :  { %v183_v13 = vpop.f32.mrb[8].mxu0  ;;  %3155 = vst [vmem:[#allocation10_spill] sm:$0xff] %v2535_v5 }
  0xee   :  { %v184_v19 = vadd.f32 %v183_v13, %v2458_v42  ;;  %v185_v24 = vpop.f32.mrb[9].mxu0 }
  0xef   :  { %v2495_v37 = vadd.f32 %v185_v24, %v2462_v44  ;;  %v187_v38 = vpop.f32.mrb[10].mxu0 }
  0xf0   :  { %v188_v47 = vadd.f32 %v187_v38, %v2458_v42  ;;  %v189_v48 = vpop.f32.mrb[11].mxu0  ;;  %v2508_v55 = vsel %vm293_vm2, %v178_v60, %v184_v19  ;;  %v2512_v57 = vsel %vm293_vm2, %v184_v19, %v178_v60  ;;  %v2549_v38 = vadd.f32 %v255_v11, %v60_v51 }
  0xf1   :  { %v2515_v58 = vadd.f32 %v189_v48, %v2462_v44  ;;  %v343_v48 = vsel %vm2499_vm4, %v2497_v39, %v2535_v5  ;;  %v164_v51 = vadd.f32 %v2456_v41, %v2458_v42 }
  0xf2   :  { %v2539_v13 = vsel %vm293_vm2, %v174_v53, %v188_v47  ;;  %v2565_v61 = vsel %vm293_vm2, %v188_v47, %v174_v53 }
  0xf3   :  { %3156 = vst [vmem:[#allocation11_spill] sm:$0xff] %v2565_v61 }
  0xf5   :  { %v193_v11 = vpop.f32.mrb[12].mxu0 }
  0xf6   :  { %v194_v24 = vadd.f32 %v193_v11, %v2458_v42  ;;  %v195_v53 = vpop.f32.mrb[13].mxu0 }
  0xf7   :  { %v2581_v47 = vadd.f32 %v195_v53, %v2462_v44  ;;  %v197_v1 = vpop.f32.mrb[14].mxu0  ;;  %v2598_v53 = vadd.f32 %v2460_v43, %v2462_v44 }
  0xf8   :  { %v198_v19 = vadd.f32 %v197_v1, %v2458_v42  ;;  %v199_v63 = vpop.f32.mrb[15].mxu0  ;;  %v2589_v4 = vsel %vm293_vm2, %v2465_v46, %v194_v24  ;;  %v2594_v11 = vsel %vm293_vm2, %v194_v24, %v2465_v46 }
  0xf9   :  { %3157 = vst [vmem:[#allocation12_spill] sm:$0xff] %v2594_v11  ;;  %3158 = vst [vmem:[#allocation13_spill] sm:$0xff] %v2598_v53  ;;  %v2601_v54 = vadd.f32 %v199_v63, %v2462_v44 }
  0xfa   :  { %v341_v46 = vsel %vm293_vm2, %v164_v51, %v198_v19  ;;  %v2615_v43 = vsel %vm293_vm2, %v198_v19, %v164_v51 }
  0xfb   :  { %3159 = vst [vmem:[#allocation14_spill] sm:$0xff] %v2601_v54  ;;  %3160 = vst [vmem:[#allocation15_spill] sm:$0xff] %v2615_v43  ;;  %v342_v44 = vsel %vm2490_vm3, %v2598_v53, %v2601_v54 }
  0xfd   :  { %v611_v1 = vpop.f32.mrb[16].mxu0 }
  0xfe   :  { %v658_v24 = vadd.f32 %v611_v1, %v341_v46  ;;  %v613_v42 = vpop.f32.mrb[17].mxu0  ;;  %v2628_v46 = vld [vmem:[%s3137_s4] ss:$0 sm:$0xff] }
  0xff   :  { %v665_v40 = vadd.f32 %v613_v42, %v342_v44  ;;  %v615_v60 = vpop.f32.mrb[18].mxu0 }
 0x100   :  { %v1648_v41 = vmul.f32 -1.442695, %v658_v24  ;;  %v616_v2 = vpop.f32.mrb[19].mxu0 }
 0x101   :  { %v1649_v19 = vmul.f32 -1.442695, %v665_v40 }
 0x102   :  { %2011 = vpow2.f32 %v1648_v41 }
 0x103   :  { %2013 = vpow2.f32 %v1649_v19 }
 0x104   :  { %v652_v51 = vpop.f32.mrb[8].mxu1 }
 0x105   :  { %v1790_v17 = vpop.f32.mrb[9].mxu1  ;;  %v672_v60 = vadd.f32 %v2628_v46, %v652_v51 }
 0x106   :  { %v655_v39 = vpop.f32.mrb[10].mxu1 }
 0x107   :  { %v1791_v5 = vpop.f32.mrb[11].mxu1 }
 0x10c   :  { %v2012_v43 = vpop.eup %2011 }
 0x10d   :  { %v662_v11 = vadd.f32 1.0, %v2012_v43  ;;  %v2014_v61 = vpop.eup %2013 }
 0x10e   :  { %v669_v42 = vadd.f32 1.0, %v2014_v61  ;;  %v3162_v61 = vmov 0  }
 0x10f   :  { %2015 = vrcp.f32 %v662_v11 }
 0x110   :  { %2017 = vrcp.f32 %v669_v42 }
 0x119   :  { %v2016_v2 = vpop.eup %2015 }
 0x11a   :  { %v673_v40 = vmul.f32 %v2016_v2, %v672_v60  ;;  %v2018_v17 = vpop.eup %2017  ;;  %v3163_v2 = vsel %vm2490_vm3, %v2468_v49, %v2581_v47 }
 0x11b   :  { %v676_v39 = vsub.f32 1.0, %v2018_v17  ;;  %v678_v43 = vmul.f32 0.0, %v2018_v17 }
 0x11c   :  { %v674_v41 = vadd.f32 %v673_v40, %v343_v48  ;;  %v3161_v48 = vmov 0.0  }
 0x11e   :  { %2019 = vtanh.f32 %v674_v41 }
 0x128   :  { %v2020_v5 = vpop.eup %2019 }
 0x129   :  { %v677_v44 = vmul.f32 %v2020_v5, %v676_v39 }
 0x12b   :  { %v2631_v11 = vadd.f32 %v678_v43, %v677_v44 }
 0x12d   :  { %v684_v1 = vpack.c.bf16 %v2631_v11, %v2631_v11 }
 0x12f   :  { %718 = vmatmul.mubr.bf16.vlgmr.msra.gmra.mrb[20].mxu0 %v684_v1  ;;  %1809 = vmatmul.mubr.bf16.vlgmr.msra.gmra.mrb[12].mxu1 %v684_v1 }
 0x130   :  { %794 = vmatpush1.bf16.msra.mxu0 %v2242_v7  ;;  %1813 = vmatpush3.bf16.msra.mxu1 %v2295_v18 }
 0x131   :  { %795 = vmatprep.subr.bf16.mxu0 %v2248_v8  ;;  %1814 = vmatprep.subr.bf16.mxu1 %v3161_v48 }
 0x132   :  { %825 = vmatprep.mubr.bf16.mxu0 %v3162_v61  ;;  %1828 = vmatprep.mubr.msk.bf16.mxu1 %vm2167_vm1, %v3161_v48 }
 0x134   :  { %796 = vmatpush1.bf16.msra.mxu0 %v2258_v10  ;;  %1815 = vmatpush3.bf16.msra.mxu1 %v2314_v21 }
 0x135   :  { %797 = vmatprep.subr.bf16.mxu0 %v2268_v12  ;;  %1816 = vmatprep.subr.bf16.mxu1 %v3161_v48 }
 0x138   :  { %798 = vmatpush1.bf16.msra.mxu0 %v2277_v14  ;;  %1817 = vmatpush3.bf16.msra.mxu1 %v2336_v25 }
 0x139   :  { %799 = vmatprep.subr.bf16.mxu0 %v2283_v15  ;;  %1818 = vmatprep.subr.bf16.mxu1 %v3161_v48 }
 0x13c   :  { %800 = vmatpush1.bf16.msra.mxu0 %v2288_v16  ;;  %1819 = vmatpush3.bf16.msra.mxu1 %v2355_v28 }
 0x13d   :  { %801 = vmatprep.subr.bf16.mxu0 %v2306_v20  ;;  %1820 = vmatprep.subr.bf16.mxu1 %v3161_v48 }
 0x140   :  { %802 = vmatpush1.bf16.msra.mxu0 %v2319_v22  ;;  %1821 = vmatpush3.bf16.msra.mxu1 %v2379_v31 }
 0x141   :  { %803 = vmatprep.subr.bf16.mxu0 %v2326_v23  ;;  %1822 = vmatprep.subr.bf16.mxu1 %v3161_v48 }
 0x144   :  { %804 = vmatpush1.bf16.msra.mxu0 %v2342_v26  ;;  %1823 = vmatpush3.bf16.msra.mxu1 %v2395_v33 }
 0x145   :  { %805 = vmatprep.subr.bf16.mxu0 %v2350_v27  ;;  %1824 = vmatprep.subr.bf16.mxu1 %v3161_v48 }
 0x148   :  { %806 = vmatpush1.bf16.msra.mxu0 %v2362_v29  ;;  %1825 = vmatpush3.bf16.msra.mxu1 %v2404_v34 }
 0x149   :  { %807 = vmatprep.subr.bf16.mxu0 %v2370_v30  ;;  %1826 = vmatprep.subr.bf16.mxu1 %v3161_v48 }
 0x14c   :  { %808 = vmatpush1.bf16.msra.mxu0 %v2387_v32  ;;  %1827 = vmatpush3.bf16.msra.mxu1 %v2415_v35 }
 0x14d   :  { %901 = vmatprep.subr.bf16.mxu0 %v2236_v6  ;;  %1832 = vmatprep.subr.bf16.mxu1 %v3161_v48 }
 0x202   :  { %v719_v24 = vpop.f32.mrb[20].mxu0  ;;  %v760_v19 = vpop.f32.mrb[12].mxu1 }
 0x203   :  { %v766_v51 = vadd.f32 %v719_v24, %v2589_v4  ;;  %v721_v42 = vpop.f32.mrb[21].mxu0  ;;  %v1810_v60 = vpop.f32.mrb[13].mxu1 }
 0x204   :  { %v773_v40 = vadd.f32 %v721_v42, %v3163_v2  ;;  %v723_v41 = vpop.f32.mrb[22].mxu0  ;;  %v763_v17 = vpop.f32.mrb[14].mxu1  ;;  %v780_v60 = vadd.f32 %v2628_v46, %v760_v19 }
 0x205   :  { %v1650_v39 = vmul.f32 -1.442695, %v766_v51  ;;  %v724_v5 = vpop.f32.mrb[23].mxu0  ;;  %v1811_v44 = vpop.f32.mrb[15].mxu1  ;;  %v3164_v51 = vsel %vm2499_vm4, %v2486_v9, %v2504_v52 }
 0x206   :  { %v1651_v43 = vmul.f32 -1.442695, %v773_v40 }
 0x207   :  { %2021 = vpow2.f32 %v1650_v39 }
 0x208   :  { %2023 = vpow2.f32 %v1651_v43 }
 0x211   :  { %v2022_v1 = vpop.eup %2021 }
 0x212   :  { %v770_v63 = vadd.f32 1.0, %v2022_v1  ;;  %v2024_v4 = vpop.eup %2023  ;;  %v3165_v1 = vsel %vm2490_vm3, %v2475_v56, %v2515_v58 }
 0x213   :  { %v777_v24 = vadd.f32 1.0, %v2024_v4 }
 0x214   :  { %2025 = vrcp.f32 %v770_v63 }
 0x215   :  { %2027 = vrcp.f32 %v777_v24 }
 0x21e   :  { %v2026_v53 = vpop.eup %2025 }
 0x21f   :  { %v781_v54 = vmul.f32 %v2026_v53, %v780_v60  ;;  %v2028_v2 = vpop.eup %2027 }
 0x220   :  { %v784_v40 = vsub.f32 1.0, %v2028_v2  ;;  %v786_v63 = vmul.f32 %v2028_v2, %v2631_v11 }
 0x221   :  { %v782_v42 = vadd.f32 %v781_v54, %v3164_v51 }
 0x223   :  { %2029 = vtanh.f32 %v782_v42 }
 0x22d   :  { %v2030_v41 = vpop.eup %2029 }
 0x22e   :  { %v785_v17 = vmul.f32 %v2030_v41, %v784_v40 }
 0x230   :  { %v2683_v39 = vadd.f32 %v786_v63, %v785_v17 }
 0x232   :  { %v792_v19 = vpack.c.bf16 %v2683_v39, %v2683_v39 }
 0x234   :  { %826 = vmatmul.mubr.bf16.vlgmr.msra.gmra.mrb[24].mxu0 %v792_v19  ;;  %1829 = vmatmul.mubr.bf16.vlgmr.msra.gmra.mrb[16].mxu1 %v792_v19 }
 0x235   :  { %902 = vmatpush1.bf16.msra.mxu0 %v2242_v7  ;;  %1833 = vmatpush3.bf16.msra.mxu1 %v2295_v18 }
 0x236   :  { %903 = vmatprep.subr.bf16.mxu0 %v2248_v8  ;;  %1834 = vmatprep.subr.bf16.mxu1 %v3161_v48 }
 0x237   :  { %933 = vmatprep.mubr.bf16.mxu0 %v3162_v61  ;;  %1848 = vmatprep.mubr.msk.bf16.mxu1 %vm2167_vm1, %v3161_v48 }
 0x239   :  { %904 = vmatpush1.bf16.msra.mxu0 %v2258_v10  ;;  %1835 = vmatpush3.bf16.msra.mxu1 %v2314_v21 }
 0x23a   :  { %905 = vmatprep.subr.bf16.mxu0 %v2268_v12  ;;  %1836 = vmatprep.subr.bf16.mxu1 %v3161_v48 }
 0x23d   :  { %906 = vmatpush1.bf16.msra.mxu0 %v2277_v14  ;;  %1837 = vmatpush3.bf16.msra.mxu1 %v2336_v25 }
 0x23e   :  { %907 = vmatprep.subr.bf16.mxu0 %v2283_v15  ;;  %1838 = vmatprep.subr.bf16.mxu1 %v3161_v48 }
 0x241   :  { %908 = vmatpush1.bf16.msra.mxu0 %v2288_v16  ;;  %1839 = vmatpush3.bf16.msra.mxu1 %v2355_v28 }
 0x242   :  { %909 = vmatprep.subr.bf16.mxu0 %v2306_v20  ;;  %1840 = vmatprep.subr.bf16.mxu1 %v3161_v48 }
 0x245   :  { %910 = vmatpush1.bf16.msra.mxu0 %v2319_v22  ;;  %1841 = vmatpush3.bf16.msra.mxu1 %v2379_v31 }
 0x246   :  { %911 = vmatprep.subr.bf16.mxu0 %v2326_v23  ;;  %1842 = vmatprep.subr.bf16.mxu1 %v3161_v48 }
 0x249   :  { %912 = vmatpush1.bf16.msra.mxu0 %v2342_v26  ;;  %1843 = vmatpush3.bf16.msra.mxu1 %v2395_v33 }
 0x24a   :  { %913 = vmatprep.subr.bf16.mxu0 %v2350_v27  ;;  %1844 = vmatprep.subr.bf16.mxu1 %v3161_v48 }
 0x24d   :  { %914 = vmatpush1.bf16.msra.mxu0 %v2362_v29  ;;  %1845 = vmatpush3.bf16.msra.mxu1 %v2404_v34 }
 0x24e   :  { %915 = vmatprep.subr.bf16.mxu0 %v2370_v30  ;;  %1846 = vmatprep.subr.bf16.mxu1 %v3161_v48 }
 0x251   :  { %916 = vmatpush1.bf16.msra.mxu0 %v2387_v32  ;;  %1847 = vmatpush3.bf16.msra.mxu1 %v2415_v35 }
 0x252   :  { %1009 = vmatprep.subr.bf16.mxu0 %v2236_v6  ;;  %1852 = vmatprep.subr.bf16.mxu1 %v3161_v48 }
 0x307   :  { %v827_v54 = vpop.f32.mrb[24].mxu0  ;;  %v868_v53 = vpop.f32.mrb[16].mxu1 }
 0x308   :  { %v874_v5 = vadd.f32 %v827_v54, %v2539_v13  ;;  %v829_v44 = vpop.f32.mrb[25].mxu0  ;;  %v1830_v43 = vpop.f32.mrb[17].mxu1  ;;  %v888_v19 = vadd.f32 %v2628_v46, %v868_v53 }
 0x309   :  { %v881_v4 = vadd.f32 %v829_v44, %v3165_v1  ;;  %v831_v24 = vpop.f32.mrb[26].mxu0  ;;  %v871_v60 = vpop.f32.mrb[18].mxu1 }
 0x30a   :  { %v1652_v51 = vmul.f32 -1.442695, %v874_v5  ;;  %v832_v42 = vpop.f32.mrb[27].mxu0  ;;  %v1831_v2 = vpop.f32.mrb[19].mxu1  ;;  %v3166_v5 = vsel %vm2499_vm4, %v2479_v62, %v2549_v38 }
 0x30b   :  { %v1653_v40 = vmul.f32 -1.442695, %v881_v4 }
 0x30c   :  { %2031 = vpow2.f32 %v1652_v51 }
 0x30d   :  { %2033 = vpow2.f32 %v1653_v40 }
 0x316   :  { %v2032_v41 = vpop.eup %2031 }
 0x317   :  { %v878_v17 = vadd.f32 1.0, %v2032_v41  ;;  %v2034_v13 = vpop.eup %2033 }
 0x318   :  { %v885_v63 = vadd.f32 1.0, %v2034_v13 }
 0x319   :  { %2035 = vrcp.f32 %v878_v17 }
 0x31a   :  { %2037 = vrcp.f32 %v885_v63  ;;  %v3167_v63 = vsel %vm2490_vm3, %v2482_v0, %v2495_v37 }
 0x323   :  { %v2036_v54 = vpop.eup %2035 }
 0x324   :  { %v889_v43 = vmul.f32 %v2036_v54, %v888_v19  ;;  %v2038_v1 = vpop.eup %2037 }
 0x325   :  { %v892_v4 = vsub.f32 1.0, %v2038_v1  ;;  %v894_v51 = vmul.f32 %v2038_v1, %v2683_v39 }
 0x326   :  { %v890_v44 = vadd.f32 %v889_v43, %v3166_v5 }
 0x328   :  { %2039 = vtanh.f32 %v890_v44 }
 0x332   :  { %v2040_v24 = vpop.eup %2039 }
 0x333   :  { %v893_v60 = vmul.f32 %v2040_v24, %v892_v4 }
 0x335   :  { %v2735_v42 = vadd.f32 %v894_v51, %v893_v60 }
 0x337   :  { %v900_v53 = vpack.c.bf16 %v2735_v42, %v2735_v42 }
 0x339   :  { %934 = vmatmul.mubr.bf16.vlgmr.msra.gmra.mrb[28].mxu0 %v900_v53  ;;  %1849 = vmatmul.mubr.bf16.vlgmr.msra.gmra.mrb[20].mxu1 %v900_v53 }
 0x33a   :  { %1010 = vmatpush1.bf16.msra.mxu0 %v2242_v7  ;;  %1853 = vmatpush3.bf16.msra.mxu1 %v2295_v18 }
 0x33b   :  { %1011 = vmatprep.subr.bf16.mxu0 %v2248_v8  ;;  %1854 = vmatprep.subr.bf16.mxu1 %v3161_v48 }
 0x33c   :  { %1041 = vmatprep.mubr.bf16.mxu0 %v3162_v61  ;;  %1868 = vmatprep.mubr.msk.bf16.mxu1 %vm2167_vm1, %v3161_v48 }
 0x33e   :  { %1012 = vmatpush1.bf16.msra.mxu0 %v2258_v10  ;;  %1855 = vmatpush3.bf16.msra.mxu1 %v2314_v21 }
 0x33f   :  { %1013 = vmatprep.subr.bf16.mxu0 %v2268_v12  ;;  %1856 = vmatprep.subr.bf16.mxu1 %v3161_v48 }
 0x342   :  { %1014 = vmatpush1.bf16.msra.mxu0 %v2277_v14  ;;  %1857 = vmatpush3.bf16.msra.mxu1 %v2336_v25 }
 0x343   :  { %1015 = vmatprep.subr.bf16.mxu0 %v2283_v15  ;;  %1858 = vmatprep.subr.bf16.mxu1 %v3161_v48 }
 0x346   :  { %1016 = vmatpush1.bf16.msra.mxu0 %v2288_v16  ;;  %1859 = vmatpush3.bf16.msra.mxu1 %v2355_v28 }
 0x347   :  { %1017 = vmatprep.subr.bf16.mxu0 %v2306_v20  ;;  %1860 = vmatprep.subr.bf16.mxu1 %v3161_v48 }
 0x34a   :  { %1018 = vmatpush1.bf16.msra.mxu0 %v2319_v22  ;;  %1861 = vmatpush3.bf16.msra.mxu1 %v2379_v31 }
 0x34b   :  { %1019 = vmatprep.subr.bf16.mxu0 %v2326_v23  ;;  %1862 = vmatprep.subr.bf16.mxu1 %v3161_v48 }
 0x34e   :  { %1020 = vmatpush1.bf16.msra.mxu0 %v2342_v26  ;;  %1863 = vmatpush3.bf16.msra.mxu1 %v2395_v33 }
 0x34f   :  { %1021 = vmatprep.subr.bf16.mxu0 %v2350_v27  ;;  %1864 = vmatprep.subr.bf16.mxu1 %v3161_v48 }
 0x352   :  { %1022 = vmatpush1.bf16.msra.mxu0 %v2362_v29  ;;  %1865 = vmatpush3.bf16.msra.mxu1 %v2404_v34 }
 0x353   :  { %1023 = vmatprep.subr.bf16.mxu0 %v2370_v30  ;;  %1866 = vmatprep.subr.bf16.mxu1 %v3161_v48 }
 0x356   :  { %1024 = vmatpush1.bf16.msra.mxu0 %v2387_v32  ;;  %1867 = vmatpush3.bf16.msra.mxu1 %v2415_v35 }
 0x357   :  { %1117 = vmatprep.subr.bf16.mxu0 %v2236_v6  ;;  %1872 = vmatprep.subr.bf16.mxu1 %v3161_v48 }
 0x40c   :  { %v935_v2 = vpop.f32.mrb[28].mxu0  ;;  %v976_v40 = vpop.f32.mrb[20].mxu1 }
 0x40d   :  { %v982_v41 = vadd.f32 %v935_v2, %v2508_v55  ;;  %v937_v17 = vpop.f32.mrb[29].mxu0  ;;  %v1850_v13 = vpop.f32.mrb[21].mxu1  ;;  %v996_v51 = vadd.f32 %v2628_v46, %v976_v40 }
 0x40e   :  { %v989_v19 = vadd.f32 %v937_v17, %v3167_v63  ;;  %v939_v54 = vpop.f32.mrb[30].mxu0  ;;  %v979_v43 = vpop.f32.mrb[22].mxu1 }
 0x40f   :  { %v1654_v5 = vmul.f32 -1.442695, %v982_v41  ;;  %v940_v44 = vpop.f32.mrb[31].mxu0  ;;  %v1851_v1 = vpop.f32.mrb[23].mxu1  ;;  %v3168_v41 = vsel %vm2499_vm4, %v2484_v3, %v2517_v59 }
 0x410   :  { %v1655_v6 = vmul.f32 -1.442695, %v989_v19 }
 0x411   :  { %2041 = vpow2.f32 %v1654_v5 }
 0x412   :  { %2043 = vpow2.f32 %v1655_v6 }
 0x41b   :  { %v2042_v4 = vpop.eup %2041 }
 0x41c   :  { %v986_v24 = vadd.f32 1.0, %v2042_v4  ;;  %v2044_v55 = vpop.eup %2043 }
 0x41d   :  { %v993_v60 = vadd.f32 1.0, %v2044_v55 }
 0x41e   :  { %2045 = vrcp.f32 %v986_v24 }
 0x41f   :  { %2047 = vrcp.f32 %v993_v60 }
 0x428   :  { %v2046_v53 = vpop.eup %2045 }
 0x429   :  { %v997_v2 = vmul.f32 %v2046_v53, %v996_v51  ;;  %v2048_v13 = vpop.eup %2047 }
 0x42a   :  { %v1000_v63 = vsub.f32 1.0, %v2048_v13  ;;  %v1002_v43 = vmul.f32 %v2048_v13, %v2735_v42 }
 0x42b   :  { %v998_v17 = vadd.f32 %v997_v2, %v3168_v41 }
 0x42d   :  { %2049 = vtanh.f32 %v998_v17 }
 0x437   :  { %v2050_v19 = vpop.eup %2049 }
 0x438   :  { %v1001_v54 = vmul.f32 %v2050_v19, %v1000_v63 }
 0x43a   :  { %v2787_v5 = vadd.f32 %v1002_v43, %v1001_v54  ;;  %v2865_v54 = vld [vmem:[%s3136_s3 + $0x8] ss:$12 sps:$4 sm:$0xff]  }
 0x43b   :  { %v2871_v43 = vld [vmem:[%s3136_s3 + $0x1c] ss:$12 sps:$4 sm:$0xff]  }
 0x43c   :  { %v1008_v40 = vpack.c.bf16 %v2787_v5, %v2787_v5 }
 0x43e   :  { %1042 = vmatmul.mubr.bf16.vlgmr.msra.gmra.mrb[32].mxu0 %v1008_v40  ;;  %1869 = vmatmul.mubr.bf16.vlgmr.msra.gmra.mrb[24].mxu1 %v1008_v40  ;;  %v2887_v40 = vld [vmem:[%s3136_s3 + $0x20] ss:$12 sps:$4 sm:$0xff]  }
 0x43f   :  { %1118 = vmatpush1.bf16.msra.mxu0 %v2242_v7  ;;  %1873 = vmatpush3.bf16.msra.mxu1 %v2295_v18  ;;  %v2827_v7 = vld [vmem:[%s3136_s3 + $0x4] ss:$12 sps:$4 sm:$0xff]  }
 0x440   :  { %1119 = vmatprep.subr.bf16.mxu0 %v2248_v8  ;;  %1874 = vmatprep.subr.bf16.mxu1 %v3161_v48 }
 0x441   :  { %1149 = vmatprep.mubr.bf16.mxu0 %v3162_v61  ;;  %1888 = vmatprep.mubr.msk.bf16.mxu1 %vm2167_vm1, %v3161_v48 }
 0x443   :  { %1120 = vmatpush1.bf16.msra.mxu0 %v2258_v10  ;;  %1875 = vmatpush3.bf16.msra.mxu1 %v2314_v21 }
 0x444   :  { %1121 = vmatprep.subr.bf16.mxu0 %v2268_v12  ;;  %1876 = vmatprep.subr.bf16.mxu1 %v3161_v48 }
 0x447   :  { %1122 = vmatpush1.bf16.msra.mxu0 %v2277_v14  ;;  %1877 = vmatpush3.bf16.msra.mxu1 %v2336_v25 }
 0x448   :  { %1123 = vmatprep.subr.bf16.mxu0 %v2283_v15  ;;  %1878 = vmatprep.subr.bf16.mxu1 %v3161_v48 }
 0x44b   :  { %1124 = vmatpush1.bf16.msra.mxu0 %v2288_v16  ;;  %1879 = vmatpush3.bf16.msra.mxu1 %v2355_v28  ;;  %v3169_v16 = vsel %vm2490_vm3, %v2495_v37, %v2482_v0  ;;  %v3170_v0 = vsel %vm2499_vm4, %v2517_v59, %v2484_v3  ;;  %v2859_v59 = vld [vmem:[%s3136_s3] ss:$12 sps:$4 sm:$0xff]  }
 0x44c   :  { %1125 = vmatprep.subr.bf16.mxu0 %v2306_v20  ;;  %1880 = vmatprep.subr.bf16.mxu1 %v3161_v48 }
 0x44f   :  { %1126 = vmatpush1.bf16.msra.mxu0 %v2319_v22  ;;  %1881 = vmatpush3.bf16.msra.mxu1 %v2379_v31 }
 0x450   :  { %1127 = vmatprep.subr.bf16.mxu0 %v2326_v23  ;;  %1882 = vmatprep.subr.bf16.mxu1 %v3161_v48 }
 0x453   :  { %1128 = vmatpush1.bf16.msra.mxu0 %v2342_v26  ;;  %1883 = vmatpush3.bf16.msra.mxu1 %v2395_v33 }
 0x454   :  { %1129 = vmatprep.subr.bf16.mxu0 %v2350_v27  ;;  %1884 = vmatprep.subr.bf16.mxu1 %v3161_v48 }
 0x457   :  { %1130 = vmatpush1.bf16.msra.mxu0 %v2362_v29  ;;  %1885 = vmatpush3.bf16.msra.mxu1 %v2404_v34 }
 0x458   :  { %1131 = vmatprep.subr.bf16.mxu0 %v2370_v30  ;;  %1886 = vmatprep.subr.bf16.mxu1 %v3161_v48 }
 0x45b   :  { %1132 = vmatpush1.bf16.msra.mxu0 %v2387_v32  ;;  %1887 = vmatpush3.bf16.msra.mxu1 %v2415_v35 }
 0x45c   :  { %1225 = vmatprep.subr.bf16.mxu0 %v2827_v7  ;;  %1892 = vmatprep.subr.bf16.mxu1 %v3161_v48 }
 0x511   :  { %v1043_v8 = vpop.f32.mrb[32].mxu0  ;;  %v1084_v10 = vpop.f32.mrb[24].mxu1 }
 0x512   :  { %v1090_v12 = vadd.f32 %v1043_v8, %v2512_v57  ;;  %v1045_v14 = vpop.f32.mrb[33].mxu0  ;;  %v1870_v15 = vpop.f32.mrb[25].mxu1  ;;  %v1104_v24 = vadd.f32 %v2628_v46, %v1084_v10  ;;  %v2893_v8 = vld [vmem:[%s3136_s3 + $0x34] ss:$12 sps:$4 sm:$0xff]   ;;  %v2900_v10 = vld [vmem:[%s3136_s3 + $0x30] ss:$12 sps:$4 sm:$0xff]  }
 0x513   :  { %v1097_v18 = vadd.f32 %v1045_v14, %v3169_v16  ;;  %v1047_v20 = vpop.f32.mrb[34].mxu0  ;;  %v1087_v21 = vpop.f32.mrb[26].mxu1  ;;  %v2914_v14 = vld [vmem:[%s3136_s3 + $0x48] ss:$12 sps:$4 sm:$0xff]   ;;  %v2928_v15 = vld [vmem:[%s3136_s3 + $0x60] ss:$12 sps:$4 sm:$0xff]  }
 0x514   :  { %v1656_v22 = vmul.f32 -1.442695, %v1090_v12  ;;  %v1048_v23 = vpop.f32.mrb[35].mxu0  ;;  %v1871_v26 = vpop.f32.mrb[27].mxu1  ;;  %v2907_v12 = vld [vmem:[%s3136_s3 + $0x4c] ss:$12 sps:$4 sm:$0xff]  }
 0x515   :  { %v1657_v44 = vmul.f32 -1.442695, %v1097_v18  ;;  %v2942_v16 = vld [vmem:[%s3136_s3 + $0x78] ss:$12 sps:$4 sm:$0xff]  }
 0x516   :  { %2051 = vpow2.f32 %v1656_v22 }
 0x517   :  { %2053 = vpow2.f32 %v1657_v44 }
 0x520   :  { %v2052_v1 = vpop.eup %2051 }
 0x521   :  { %v1094_v6 = vadd.f32 1.0, %v2052_v1  ;;  %v2054_v57 = vpop.eup %2053 }
 0x522   :  { %v1101_v4 = vadd.f32 1.0, %v2054_v57 }
 0x523   :  { %2055 = vrcp.f32 %v1094_v6 }
 0x524   :  { %2057 = vrcp.f32 %v1101_v4 }
 0x52d   :  { %v2056_v55 = vpop.eup %2055 }
 0x52e   :  { %v1105_v60 = vmul.f32 %v2056_v55, %v1104_v24  ;;  %v2058_v51 = vpop.eup %2057 }
 0x52f   :  { %v1108_v53 = vsub.f32 1.0, %v2058_v51  ;;  %v1110_v17 = vmul.f32 %v2058_v51, %v2787_v5 }
 0x530   :  { %v1106_v37 = vadd.f32 %v1105_v60, %v3170_v0 }
 0x532   :  { %2059 = vtanh.f32 %v1106_v37 }
 0x53c   :  { %v2060_v2 = vpop.eup %2059 }
 0x53d   :  { %v1109_v41 = vmul.f32 %v2060_v2, %v1108_v53 }
 0x53f   :  { %v2844_v13 = vadd.f32 %v1110_v17, %v1109_v41  ;;  %v2110_v17 = vld [vmem:[%s3136_s3 + $0x80] ss:$12 sps:$4 sm:$0xff]  }
 0x541   :  { %v1116_v63 = vpack.c.bf16 %v2844_v13, %v2844_v13  ;;  %v1457_v19 = vsel %vm293_vm2, %v2787_v5, %v2844_v13  ;;  %v1459_v3 = vsel %vm293_vm2, %v2844_v13, %v2787_v5  ;;  %v2881_v5 = vld [vmem:[%s3136_s3 + $0x18] ss:$12 sps:$4 sm:$0xff]  }
 0x542   :  { %1458 = vst [vmem:[#allocation3 + $0x18] sm:$0xff] %v1457_v19  ;;  %1460 = vst [vmem:[#allocation3 + $0x20] sm:$0xff] %v1459_v3  ;;  %v2113_v19 = vld [vmem:[%s3136_s3 + $0x98] ss:$12 sps:$4 sm:$0xff]  }
 0x543   :  { %1150 = vmatmul.mubr.bf16.vlgmr.msra.gmra.mrb[36].mxu0 %v1116_v63  ;;  %1889 = vmatmul.mubr.bf16.vlgmr.msra.gmra.mrb[28].mxu1 %v1116_v63  ;;  %v2112_v63 = vld [vmem:[%s3136_s3 + $0x90] ss:$12 sps:$4 sm:$0xff]   ;;  %v2114_v3 = vld [vmem:[%s3136_s3 + $0xac] ss:$12 sps:$4 sm:$0xff]  }
 0x544   :  { %1226 = vmatpush1.bf16.msra.mxu0 %v2859_v59  ;;  %1893 = vmatpush3.bf16.msra.mxu1 %v2865_v54 }
 0x545   :  { %1227 = vmatprep.subr.bf16.mxu0 %v2871_v43  ;;  %1894 = vmatprep.subr.bf16.mxu1 %v3161_v48 }
 0x546   :  { %1257 = vmatprep.mubr.bf16.mxu0 %v3162_v61  ;;  %1908 = vmatprep.mubr.msk.bf16.mxu1 %vm2167_vm1, %v3161_v48 }
 0x548   :  { %1228 = vmatpush1.bf16.msra.mxu0 %v2881_v5  ;;  %1895 = vmatpush3.bf16.msra.mxu1 %v2887_v40 }
 0x549   :  { %1229 = vmatprep.subr.bf16.mxu0 %v2893_v8  ;;  %1896 = vmatprep.subr.bf16.mxu1 %v3161_v48 }
 0x54c   :  { %1230 = vmatpush1.bf16.msra.mxu0 %v2900_v10  ;;  %1897 = vmatpush3.bf16.msra.mxu1 %v2336_v25  ;;  %v2921_v25 = vld [vmem:[%s3136_s3 + $0x64] ss:$12 sps:$4 sm:$0xff]  }
 0x54d   :  { %1231 = vmatprep.subr.bf16.mxu0 %v2907_v12  ;;  %1898 = vmatprep.subr.bf16.mxu1 %v3161_v48 }
 0x550   :  { %1232 = vmatpush1.bf16.msra.mxu0 %v2914_v14  ;;  %1899 = vmatpush3.bf16.msra.mxu1 %v2355_v28  ;;  %v2935_v28 = vld [vmem:[%s3136_s3 + $0x7c] ss:$12 sps:$4 sm:$0xff]  }
 0x551   :  { %1233 = vmatprep.subr.bf16.mxu0 %v2921_v25  ;;  %1900 = vmatprep.subr.bf16.mxu1 %v3161_v48 }
 0x554   :  { %1234 = vmatpush1.bf16.msra.mxu0 %v2928_v15  ;;  %1901 = vmatpush3.bf16.msra.mxu1 %v2379_v31 }
 0x555   :  { %1235 = vmatprep.subr.bf16.mxu0 %v2935_v28  ;;  %1902 = vmatprep.subr.bf16.mxu1 %v3161_v48 }
 0x558   :  { %1236 = vmatpush1.bf16.msra.mxu0 %v2942_v16  ;;  %1903 = vmatpush3.bf16.msra.mxu1 %v2395_v33  ;;  %v3171_v33 = vld [vmem:[#allocation11_spill] sm:$0xff] }
 0x559   :  { %1237 = vmatprep.subr.bf16.mxu0 %v2350_v27  ;;  %1904 = vmatprep.subr.bf16.mxu1 %v3161_v48 }
 0x55c   :  { %1238 = vmatpush1.bf16.msra.mxu0 %v2362_v29  ;;  %1905 = vmatpush3.bf16.msra.mxu1 %v2404_v34 }
 0x55d   :  { %1239 = vmatprep.subr.bf16.mxu0 %v2370_v30  ;;  %1906 = vmatprep.subr.bf16.mxu1 %v3161_v48  ;;  %v3172_v30 = vsel %vm2490_vm3, %v2515_v58, %v2475_v56  ;;  %v3173_v56 = vsel %vm2499_vm4, %v2549_v38, %v2479_v62  ;;  %v2107_v38 = vld [vmem:[%s3136_s3 + $0x38] ss:$12 sps:$4 sm:$0xff]  }
 0x560   :  { %1240 = vmatpush1.bf16.msra.mxu0 %v2387_v32  ;;  %1907 = vmatpush3.bf16.msra.mxu1 %v2415_v35 }
 0x561   :  { %1333 = vmatprep.subr.bf16.mxu0 %v2827_v7  ;;  %1912 = vmatprep.subr.bf16.mxu1 %v3161_v48 }
 0x616   :  { %v1151_v31 = vpop.f32.mrb[36].mxu0  ;;  %v1192_v27 = vpop.f32.mrb[28].mxu1 }
 0x617   :  { %v1198_v18 = vadd.f32 %v1151_v31, %v3171_v33  ;;  %v1153_v20 = vpop.f32.mrb[37].mxu0  ;;  %v1890_v29 = vpop.f32.mrb[29].mxu1  ;;  %v1212_v57 = vadd.f32 %v2628_v46, %v1192_v27 }
 0x618   :  { %v1205_v34 = vadd.f32 %v1153_v20, %v3172_v30  ;;  %v1155_v21 = vpop.f32.mrb[38].mxu0  ;;  %v1195_v32 = vpop.f32.mrb[30].mxu1 }
 0x619   :  { %v1658_v22 = vmul.f32 -1.442695, %v1198_v18  ;;  %v1156_v35 = vpop.f32.mrb[39].mxu0  ;;  %v1891_v23 = vpop.f32.mrb[31].mxu1 }
 0x61a   :  { %v1659_v7 = vmul.f32 -1.442695, %v1205_v34 }
 0x61b   :  { %2061 = vpow2.f32 %v1658_v22 }
 0x61c   :  { %2063 = vpow2.f32 %v1659_v7 }
 0x625   :  { %v2062_v26 = vpop.eup %2061 }
 0x626   :  { %v1202_v44 = vadd.f32 1.0, %v2062_v26  ;;  %v2064_v1 = vpop.eup %2063 }
 0x627   :  { %v1209_v6 = vadd.f32 1.0, %v2064_v1 }
 0x628   :  { %2065 = vrcp.f32 %v1202_v44 }
 0x629   :  { %2067 = vrcp.f32 %v1209_v6 }
 0x632   :  { %v2066_v4 = vpop.eup %2065 }
 0x633   :  { %v1213_v24 = vmul.f32 %v2066_v4, %v1212_v57  ;;  %v2068_v55 = vpop.eup %2067  ;;  %v2006_v4 = vld [vmem:[%s3138_s5 + $0x18] sm:$0xff]  }
 0x634   :  { %v1216_v60 = vsub.f32 1.0, %v2068_v55  ;;  %v1218_v51 = vmul.f32 %v2068_v55, %v2844_v13  ;;  %v2111_v13 = vld [vmem:[%s3136_s3 + $0x94] ss:$12 sps:$4 sm:$0xff]   ;;  %v2010_v55 = vld [vmem:[%s3138_s5 + $0x38] sm:$0xff]  }
 0x635   :  { %v1214_v58 = vadd.f32 %v1213_v24, %v3173_v56  ;;  %v2007_v24 = vld [vmem:[%s3138_s5 + $0x20] sm:$0xff]   ;;  %v2008_v56 = vld [vmem:[%s3138_s5 + $0x28] sm:$0xff]  }
 0x637   :  { %2069 = vtanh.f32 %v1214_v58  ;;  %v2009_v58 = vld [vmem:[%s3138_s5 + $0x30] sm:$0xff]  }
 0x641   :  { %v2070_v0 = vpop.eup %2069 }
 0x642   :  { %v1217_v37 = vmul.f32 %v2070_v0, %v1216_v60 }
 0x644   :  { %v2969_v53 = vadd.f32 %v1218_v51, %v1217_v37  ;;  %v3177_v37 = vld [vmem:[#allocation15_spill] sm:$0xff] }
 0x646   :  { %v1224_v2 = vpack.c.bf16 %v2969_v53, %v2969_v53  ;;  %v1451_v41 = vsel %vm293_vm2, %v2735_v42, %v2969_v53  ;;  %v1453_v62 = vsel %vm293_vm2, %v2969_v53, %v2735_v42  ;;  %v2109_v42 = vld [vmem:[%s3136_s3 + $0x68] ss:$12 sps:$4 sm:$0xff]  }
 0x647   :  { %1452 = vst [vmem:[#allocation3 + $0x10] sm:$0xff] %v1451_v41  ;;  %1454 = vst [vmem:[#allocation3 + $0x28] sm:$0xff] %v1453_v62  ;;  %v3178_v41 = vld [vmem:[#allocation14_spill] sm:$0xff]  ;;  %v3179_v62 = vld [vmem:[#allocation13_spill] sm:$0xff] }
 0x648   :  { %1258 = vmatmul.mubr.bf16.vlgmr.msra.gmra.mrb[40].mxu0 %v1224_v2  ;;  %1909 = vmatmul.mubr.bf16.vlgmr.msra.gmra.mrb[32].mxu1 %v1224_v2 }
 0x649   :  { %1334 = vmatpush1.bf16.msra.mxu0 %v2859_v59  ;;  %1913 = vmatpush3.bf16.msra.mxu1 %v2865_v54  ;;  %v2115_v59 = vld [vmem:[%s3136_s3 + $0xa8] ss:$12 sps:$4 sm:$0xff]   ;;  %v2116_v54 = vld [vmem:[%s3136_s3 + $0xb0] ss:$12 sps:$4 sm:$0xff]  }
 0x64a   :  { %1335 = vmatprep.subr.bf16.mxu0 %v2871_v43  ;;  %1914 = vmatprep.subr.bf16.mxu1 %v3161_v48 }
 0x64b   :  { %1365 = vmatprep.mubr.bf16.mxu0 %v3162_v61  ;;  %1928 = vmatprep.mubr.msk.bf16.mxu1 %vm2167_vm1, %v3161_v48  ;;  %v2108_v61 = vld [vmem:[%s3136_s3 + $0x50] ss:$12 sps:$4 sm:$0xff]  }
 0x64d   :  { %1336 = vmatpush1.bf16.msra.mxu0 %v2881_v5  ;;  %1915 = vmatpush3.bf16.msra.mxu1 %v2887_v40  ;;  %v3174_v40 = vld [vmem:[#allocation12_spill] sm:$0xff] }
 0x64e   :  { %1337 = vmatprep.subr.bf16.mxu0 %v2893_v8  ;;  %1916 = vmatprep.subr.bf16.mxu1 %v3161_v48 }
 0x651   :  { %1338 = vmatpush1.bf16.msra.mxu0 %v2900_v10  ;;  %1917 = vmatpush3.bf16.msra.mxu1 %v2107_v38  ;;  %v3180_v38 = vsel %vm2490_vm3, %v3178_v41, %v3179_v62 }
 0x652   :  { %1339 = vmatprep.subr.bf16.mxu0 %v2907_v12  ;;  %1918 = vmatprep.subr.bf16.mxu1 %v3161_v48 }
 0x655   :  { %1340 = vmatpush1.bf16.msra.mxu0 %v2914_v14  ;;  %1919 = vmatpush3.bf16.msra.mxu1 %v2108_v61  ;;  %v3175_v14 = vsel %vm2490_vm3, %v2581_v47, %v2468_v49  ;;  %v3176_v49 = vsel %vm2499_vm4, %v2504_v52, %v2486_v9  ;;  %v2003_v9 = vld [vmem:[%s3138_s5] sm:$0xff]   ;;  %v2004_v52 = vld [vmem:[%s3138_s5 + $0x8] sm:$0xff]  }
 0x656   :  { %1341 = vmatprep.subr.bf16.mxu0 %v2921_v25  ;;  %1920 = vmatprep.subr.bf16.mxu1 %v3161_v48 }
 0x659   :  { %1342 = vmatpush1.bf16.msra.mxu0 %v2928_v15  ;;  %1921 = vmatpush3.bf16.msra.mxu1 %v2109_v42 }
 0x65a   :  { %1343 = vmatprep.subr.bf16.mxu0 %v2935_v28  ;;  %1922 = vmatprep.subr.bf16.mxu1 %v3161_v48 }
 0x65d   :  { %1344 = vmatpush1.bf16.msra.mxu0 %v2942_v16  ;;  %1923 = vmatpush3.bf16.msra.mxu1 %v2110_v17 }
 0x65e   :  { %1345 = vmatprep.subr.bf16.mxu0 %v2111_v13  ;;  %1924 = vmatprep.subr.bf16.mxu1 %v3161_v48 }
 0x661   :  { %1346 = vmatpush1.bf16.msra.mxu0 %v2112_v63  ;;  %1925 = vmatpush3.bf16.msra.mxu1 %v2113_v19 }
 0x662   :  { %1347 = vmatprep.subr.bf16.mxu0 %v2114_v3  ;;  %1926 = vmatprep.subr.bf16.mxu1 %v3161_v48 }
 0x665   :  { %1348 = vmatpush1.bf16.msra.mxu0 %v2115_v59  ;;  %1927 = vmatpush3.bf16.msra.mxu1 %v2116_v54 }
 0x666   :  { %1932 = vmatprep.subr.bf16.mxu0 %v3161_v48 }
 0x71b   :  { %v1259_v43 = vpop.f32.mrb[40].mxu0  ;;  %v1300_v5 = vpop.f32.mrb[32].mxu1 }
 0x71c   :  { %v1306_v8 = vadd.f32 %v1259_v43, %v3174_v40  ;;  %v1261_v10 = vpop.f32.mrb[41].mxu0  ;;  %v1910_v12 = vpop.f32.mrb[33].mxu1  ;;  %v1320_v34 = vadd.f32 %v2628_v46, %v1300_v5 }
 0x71d   :  { %v1313_v25 = vadd.f32 %v1261_v10, %v3175_v14  ;;  %v1263_v15 = vpop.f32.mrb[42].mxu0  ;;  %v1303_v28 = vpop.f32.mrb[34].mxu1  ;;  %v3182_v10 = vld [vmem:[#allocation9_spill] sm:$0xff] }
 0x71e   :  { %v1660_v16 = vmul.f32 -1.442695, %v1306_v8  ;;  %v1264_v31 = vpop.f32.mrb[43].mxu0  ;;  %v1911_v27 = vpop.f32.mrb[35].mxu1  ;;  %v3181_v8 = vld [vmem:[#allocation10_spill] sm:$0xff] }
 0x71f   :  { %v1661_v33 = vmul.f32 -1.442695, %v1313_v25  ;;  %v3183_v12 = vsel %vm2499_vm4, %v3181_v8, %v3182_v10 }
 0x720   :  { %2071 = vpow2.f32 %v1660_v16 }
 0x721   :  { %2073 = vpow2.f32 %v1661_v33 }
 0x72a   :  { %v2072_v18 = vpop.eup %2071 }
 0x72b   :  { %v1310_v20 = vadd.f32 1.0, %v2072_v18  ;;  %v2074_v29 = vpop.eup %2073 }
 0x72c   :  { %v1317_v30 = vadd.f32 1.0, %v2074_v29 }
 0x72d   :  { %2075 = vrcp.f32 %v1310_v20 }
 0x72e   :  { %2077 = vrcp.f32 %v1317_v30 }
 0x737   :  { %v2076_v21 = vpop.eup %2075 }
 0x738   :  { %v1321_v32 = vmul.f32 %v2076_v21, %v1320_v34  ;;  %v2078_v22 = vpop.eup %2077 }
 0x739   :  { %v1324_v35 = vsub.f32 1.0, %v2078_v22  ;;  %v1326_v26 = vmul.f32 %v2078_v22, %v2969_v53 }
 0x73a   :  { %v1322_v47 = vadd.f32 %v1321_v32, %v3176_v49 }
 0x73c   :  { %2079 = vtanh.f32 %v1322_v47 }
 0x746   :  { %v2080_v23 = vpop.eup %2079 }
 0x747   :  { %v1325_v7 = vmul.f32 %v2080_v23, %v1324_v35 }
 0x749   :  { %v1327_v44 = vadd.f32 %v1326_v26, %v1325_v7 }
 0x74b   :  { %v1332_v1 = vpack.c.bf16 %v1327_v44, %v1327_v44  ;;  %v1445_v6 = vsel %vm293_vm2, %v2683_v39, %v1327_v44  ;;  %v1447_v57 = vsel %vm293_vm2, %v1327_v44, %v2683_v39  ;;  %v2005_v39 = vld [vmem:[%s3138_s5 + $0x10] sm:$0xff]   ;;  %s2168_s5 = smov [#allocation3]  }
 0x74c   :  { %1446 = vst [vmem:[#allocation3 + $0x8] sm:$0xff] %v1445_v6  ;;  %1448 = vst [vmem:[#allocation3 + $0x30] sm:$0xff] %v1447_v57  ;;  %s1580_s15 = sshll.u32 %s2168_s5, 4  ;;  %s1581_s15 = int_to_ptr.vmem [resolvable:$true] %s1580_s15 }
 0x74d   :  { %1366 = vmatmul.mubr.bf16.vlgmr.msra.gmra.mrb[44].mxu0 %v1332_v1  ;;  %1929 = vmatmul.mubr.bf16.vlgmr.msra.gmra.mrb[36].mxu1 %v1332_v1  ;;  %s2117_s16 = scalar_lea.vmem %s1581_s15, 1024  ;;  %p2122_p1 = scmp.lt.s32.totalorder %s1581_s15, %s1581_s15 }
 0x74e   :  { %1948 = vmatprep.mubr.msk.bf16.mxu0 %vm2167_vm1, %v3161_v48  ;;  %1933 = vmatpush3.bf16.msra.mxu0 %v2003_v9  ;;  %p2118_p0 = scmp.ne.s32.totalorder %s1581_s15, %s2117_s16  ;;  %p2123_p2 = scmp.lt.s32.totalorder %s2117_s16, %s2117_s16 }
 0x74f   :  { %1934 = vmatprep.subr.bf16.mxu0 %v3161_v48 }
 0x750   :  { %p2124_p3 = por %p2123_p2, %p2122_p1 }
 0x752   :  { %1935 = vmatpush3.bf16.msra.mxu0 %v2004_v52  ;;  %p2125_p4 = pnand %p2124_p3, %p2118_p0 }
 0x753   :  { %1936 = vmatprep.subr.bf16.mxu0 %v3161_v48 }
 0x756   :  { %1937 = vmatpush3.bf16.msra.mxu0 %v2005_v39 }
 0x757   :  { %1938 = vmatprep.subr.bf16.mxu0 %v3161_v48 }
 0x75a   :  { %1939 = vmatpush3.bf16.msra.mxu0 %v2006_v4 }
 0x75b   :  { %1940 = vmatprep.subr.bf16.mxu0 %v3161_v48 }
 0x75e   :  { %1941 = vmatpush3.bf16.msra.mxu0 %v2007_v24 }
 0x75f   :  { %1942 = vmatprep.subr.bf16.mxu0 %v3161_v48 }
 0x762   :  { %1943 = vmatpush3.bf16.msra.mxu0 %v2008_v56 }
 0x763   :  { %1944 = vmatprep.subr.bf16.mxu0 %v3161_v48 }
 0x766   :  { %1945 = vmatpush3.bf16.msra.mxu0 %v2009_v58 }
 0x767   :  { %1946 = vmatprep.subr.bf16.mxu0 %v3161_v48 }
 0x76a   :  { %1947 = vmatpush3.bf16.msra.mxu0 %v2010_v55 }
 0x820   :  { %v1367_v60 = vpop.f32.mrb[44].mxu0  ;;  %v1408_v0 = vpop.f32.mrb[36].mxu1 }
 0x821   :  { %v1414_v51 = vadd.f32 %v1367_v60, %v3177_v37  ;;  %v1369_v53 = vpop.f32.mrb[45].mxu0  ;;  %v1930_v2 = vpop.f32.mrb[37].mxu1  ;;  %v1428_v5 = vadd.f32 %v2628_v46, %v1408_v0 }
 0x822   :  { %v1421_v61 = vadd.f32 %v1369_v53, %v3180_v38  ;;  %v1371_v42 = vpop.f32.mrb[46].mxu0  ;;  %v1411_v17 = vpop.f32.mrb[38].mxu1 }
 0x823   :  { %v1662_v13 = vmul.f32 -1.442695, %v1414_v51  ;;  %v1372_v63 = vpop.f32.mrb[47].mxu0  ;;  %v1931_v19 = vpop.f32.mrb[39].mxu1 }
 0x824   :  { %v1663_v48 = vmul.f32 -1.442695, %v1421_v61 }
 0x825   :  { %2081 = vpow2.f32 %v1662_v13 }
 0x826   :  { %2083 = vpow2.f32 %v1663_v48 }
 0x82f   :  { %v2082_v3 = vpop.eup %2081 }
 0x830   :  { %v1418_v59 = vadd.f32 1.0, %v2082_v3  ;;  %v2084_v54 = vpop.eup %2083 }
 0x831   :  { %v1425_v43 = vadd.f32 1.0, %v2084_v54 }
 0x832   :  { %2085 = vrcp.f32 %v1418_v59 }
 0x833   :  { %2087 = vrcp.f32 %v1425_v43 }
 0x83c   :  { %v2086_v36 = vpop.eup %2085 }
 0x83d   :  { %v1429_v40 = vmul.f32 %v2086_v36, %v1428_v5  ;;  %v2088_v25 = vpop.eup %2087 }
 0x83e   :  { %v1432_v15 = vsub.f32 1.0, %v2088_v25  ;;  %v1434_v31 = vmul.f32 %v2088_v25, %v1327_v44 }
 0x83f   :  { %v1430_v14 = vadd.f32 %v1429_v40, %v3183_v12 }
 0x841   :  { %2089 = vtanh.f32 %v1430_v14 }
 0x84b   :  { %v2090_v28 = vpop.eup %2089 }
 0x84c   :  { %v1433_v16 = vmul.f32 %v2090_v28, %v1432_v15 }
 0x84e   :  { %v1435_v27 = vadd.f32 %v1434_v31, %v1433_v16 }
 0x850   :  { %v1439_v46 = vsel %vm293_vm2, %v2631_v11, %v1435_v27  ;;  %v1441_v33 = vsel %vm293_vm2, %v1435_v27, %v2631_v11  ;;  %v1461_v45 = vpack.c.bf16 %v1435_v27, %v1435_v27 }
 0x851   :  { %1440 = vst [vmem:[#allocation3] sm:$0xff] %v1439_v46  ;;  %1442 = vst [vmem:[#allocation3 + $0x38] sm:$0xff] %v1441_v33 }
 0x852   :  { %1949 = vmatmul.mubr.bf16.vlgmr.msra.gmra.mrb[48].mxu0 %v1461_v45 }
 0x853   :  { %2128 = shalt.err (!%p2125_p4)
}
 0x854   :  { %s2129_s19 = scalar_lea.hbm %s3140_s7, 1024 }
 0x855   :  { %p2130_p5 = scmp.ne.s32.totalorder %s3140_s7, %s2129_s19  ;;  %p2133_p6 = scmp.lt.u32.totalorder %s2129_s19, %s3140_s7 }
 0x857   :  { %p2135_p7 = pnand %p2133_p6, %p2130_p5 }
 0x859   :  { %2138 = shalt.err (!%p2135_p7)
}
 0x85a   :  { %s2169_s24 = smov 128   ;;  %s2170_s25 = smov 8   ;;  %v1664_v50 = vld [vmem:[%s3139_s6] ss:$0 sm:$0xff] }
 0x85b   :  { %1586 = dma.vmem_to_hbm [thread:$0]  %s1581_s15, 1024, %s3140_s7, [#allocation4], %s2169_s24, %s2169_s24, %s2170_s25  }
 0x85c   :  { %s2171_s28 = smov [#allocation5]  }
 0x85d   :  { %s1593_s4 = sshll.u32 %s2171_s28, 4  ;;  %s1594_s4 = int_to_ptr.vmem [resolvable:$true] %s1593_s4 }
 0x85e   :  { %s2139_s29 = scalar_lea.vmem %s1594_s4, 128  ;;  %p2144_p9 = scmp.lt.s32.totalorder %s1594_s4, %s1594_s4 }
 0x85f   :  { %p2140_p8 = scmp.ne.s32.totalorder %s1594_s4, %s2139_s29  ;;  %p2145_p10 = scmp.lt.s32.totalorder %s2139_s29, %s2139_s29 }
 0x861   :  { %p2146_p11 = por %p2145_p10, %p2144_p9 }
 0x863   :  { %p2147_p12 = pnand %p2146_p11, %p2140_p8 }
 0x925   :  { %v1567_v11 = vpop.f32.mrb[48].mxu0 }
 0x926   :  { %v1568_v18 = vadd.f32 %v1664_v50, %v1567_v11  ;;  %v1950_v20 = vpop.f32.mrb[49].mxu0 }
 0x927   :  { %v1570_v29 = vpop.f32.mrb[50].mxu0 }
 0x928   :  { %2091 = vtanh.f32 %v1568_v18  ;;  %v1951_v30 = vpop.f32.mrb[51].mxu0 }
 0x932   :  { %v2092_v34 = vpop.eup %2091 }
 0x933   :  { %1574 = vst.msk [vmem:[#allocation5] sm:$0xff] %vm116_vm0, %v2092_v34 }
 0x934   :  { %2150 = shalt.err (!%p2147_p12)
}
 0x935   :  { %s2151_s30 = scalar_lea.hbm %s3141_s8, 128 }
 0x936   :  { %p2152_p13 = scmp.ne.s32.totalorder %s3141_s8, %s2151_s30  ;;  %p2155_p0 = scmp.lt.u32.totalorder %s2151_s30, %s3141_s8 }
 0x938   :  { %p2157_p1 = pnand %p2155_p0, %p2152_p13 }
 0x93a   :  { %2160 = shalt.err (!%p2157_p1)
}
 0x93b   :  { %1596 = dma.vmem_to_hbm [thread:$0]  %s1594_s4, 128, %s3141_s8, [#allocation6]  }
 0x93c   :  { %2161 = dma.done.wait [#allocation4], 1024  }
 0x93d   :  { %2162 = vsyncadd [#allocation4], 4294966272 }
 0x93e   :  { %2163 = dma.done.wait [#allocation6], 128  }
 0x93f   :  { %2164 = vsyncadd [#allocation6], 4294967168 }
 0x940   :  { %1603 = vsyncpa [#allocation4], 1 }
 0x941   :  { %1604 = vsyncpa [#allocation6], 1 }

</bundles_post_ra>
